<compile_context>
chip_gen: v7x
topology: tpu7x:2x2x1
jax: 0.10.0
libtpu: 0.0.40
codegen_flags: <defaults>
</compile_context>

<pallas_src>
import functools
import math

import jax
import jax.numpy as jnp
from jax.experimental import pallas as pl
from jax.experimental.pallas import tpu as pltpu


def _round_up(x: int, m: int) -> int:
    return ((x + m - 1) // m) * m


def _cdiv(a: int, b: int) -> int:
    return -(-a // b)


def _tpu_vmem_bytes() -> int:
    try:
        return int(pltpu.get_tpu_info().vmem_capacity_bytes)
    except Exception:
        return 128 << 20  # conservative default (v5e/v6e)


# --------------------------------------------------------------------------
# Kernels
# --------------------------------------------------------------------------
def _ffn_resident_kernel(x_ref, w1_ref, b1_ref, w2_ref, b2_ref, o_ref, *,
                         approximate_gelu, precision):
    # x_ref:  (TM, Hp) tile of flattened tokens (storage dtype)
    # w1_ref: (Hp, Ip), b1_ref: (1, Ip), w2_ref: (Ip, Hp), b2_ref: (1, Hp)
    h = jnp.dot(x_ref[...], w1_ref[...],
                preferred_element_type=jnp.float32, precision=precision)
    h = h + b1_ref[...].astype(jnp.float32)
    # Tanh GELU by default -> transcendental goes to the EUP slot (free vs the
    # VALU-heavy erf polynomial on v6e/v7x). Exact erf via approximate_gelu=False.
    h = jax.nn.gelu(h, approximate=approximate_gelu)
    # intermediate_dropout: identity in eval mode.
    out = jnp.dot(h.astype(w2_ref.dtype), w2_ref[...],
                  preferred_element_type=jnp.float32, precision=precision)
    out = out + b2_ref[...].astype(jnp.float32)
    # output_dropout: identity in eval mode.
    o_ref[...] = out.astype(o_ref.dtype)


def _ffn_stream_kernel(x_ref, w1_ref, b1_ref, w2_ref, b2_ref, o_ref, acc_ref, *,
                       approximate_gelu, precision):
    # Streaming along the intermediate dim: grid = (M tiles, I chunks).
    # x_ref:  (TM, Hp)    w1_ref: (Hp, TI)   b1_ref: (1, TI)
    # w2_ref: (TI, Hp)    b2_ref: (1, Hp)    acc_ref: (TM, Hp) f32 scratch
    j = pl.program_id(1)

    @pl.when(j == 0)
    def _():
        acc_ref[...] = jnp.zeros_like(acc_ref)

    h = jnp.dot(x_ref[...], w1_ref[...],
                preferred_element_type=jnp.float32, precision=precision)
    h = h + b1_ref[...].astype(jnp.float32)
    h = jax.nn.gelu(h, approximate=approximate_gelu)
    acc_ref[...] += jnp.dot(h.astype(w2_ref.dtype), w2_ref[...],
                            preferred_element_type=jnp.float32,
                            precision=precision)

    @pl.when(j == pl.num_programs(1) - 1)
    def _():
        o_ref[...] = (acc_ref[...]
                      + b2_ref[...].astype(jnp.float32)).astype(o_ref.dtype)


# --------------------------------------------------------------------------
# Wrapper
# --------------------------------------------------------------------------
def transformer_transducer_feed_forward(hidden_states, w1, b1, w2, b2, *,
                                         tile_m=None, tile_i=None,
                                         approximate_gelu=True,
                                         force_streaming=False,
                                         vmem_limit_bytes=None):
    """hidden_states: (B, S, H); w1: (H, I); b1: (I,); w2: (I, H); b2: (H,).

    Weights are stored pre-transposed (in_dim, out_dim) relative to torch's
    nn.Linear so the kernel does plain row-major MXU matmuls.

    Note: for production, pass bf16 activations/weights (the kernel always
    accumulates in f32). f32 operands use Precision.HIGHEST for parity with
    the reference at a ~3-4x MXU cost.
    """
    B, S, H = hidden_states.shape
    Hw, I = w1.shape
    assert Hw == H and w2.shape == (I, H) and b1.shape == (I,) and b2.shape == (H,)

    x = hidden_states.reshape(B * S, H)
    M = B * S
    out_dtype = hidden_states.dtype

    x_it = jnp.dtype(hidden_states.dtype).itemsize
    w_it = jnp.dtype(w1.dtype).itemsize
    out_it = jnp.dtype(out_dtype).itemsize

    # Explicit matmul precision: full f32 parity for f32 operands, default
    # (fast) path for bf16.
    if jnp.dtype(hidden_states.dtype) == jnp.float32 or jnp.dtype(w1.dtype) == jnp.float32:
        precision = jax.lax.Precision.HIGHEST
    else:
        precision = None

    # Lane-dense padding: last dims -> multiples of 128. Zero padding is exact
    # (gelu(0) == 0, padded weight rows/cols are zero).
    H_pad = _round_up(H, 128)
    I_pad = _round_up(I, 128)

    # ---- chip-aware tile_m selection -------------------------------------
    vmem_cap = _tpu_vmem_bytes()
    small_vmem = vmem_cap <= (64 << 20)          # v7x-like (64 MiB / TC)
    if tile_m is None:
        target = 256 if small_vmem else (512 if I_pad <= 4096 else 256)
        n_tiles = max(1, _cdiv(M, target))
        # v7x has 2 TCs/chip: make sure the "parallel" axis has >= 2 steps.
        if small_vmem and n_tiles < 2 and M > 8:
            n_tiles = 2
        # Balance the tile against M so the last tile is not mostly padding.
        tile_m = max(8, min(target, _round_up(_cdiv(M, n_tiles), 8)))
    tile_m = max(8, _round_up(tile_m, 8))
    M_pad = _round_up(M, tile_m)

    # ---- resident-weight footprint & streaming decision -------------------
    resident_est = (
        (2 * H_pad * I_pad + I_pad + H_pad) * w_it   # W1 + W2 + b1 + b2 (single-buffered)
        + 2 * tile_m * H_pad * x_it                  # x double buffer
        + 2 * tile_m * H_pad * out_it                # out double buffer
        + tile_m * I_pad * 4                         # f32 h
        + tile_m * I_pad * w_it                      # cast copy of h for dot2
        + tile_m * H_pad * 4                         # f32 out before cast
    )
    budget_cap = int(vmem_cap * 0.85)                # hard cap on vmem_limit_bytes
    use_streaming = force_streaming or resident_est > int(vmem_cap * 0.65)

    if use_streaming:
        if tile_i is None:
            tile_i = min(512, I_pad)
        tile_i = max(128, _round_up(min(tile_i, I_pad), 128))
        I_pad = _round_up(I_pad, tile_i)
        est = (
            (2 * H_pad * tile_i + 2 * tile_i * H_pad + 2 * tile_i) * w_it  # streamed W1/W2/b1 chunks (double-buffered)
            + H_pad * w_it                           # b2 resident
            + 2 * tile_m * H_pad * x_it              # x tiles
            + 2 * tile_m * H_pad * out_it            # out tiles
            + tile_m * H_pad * 4                     # f32 acc scratch
            + tile_m * tile_i * 4                    # f32 h chunk
            + tile_m * tile_i * w_it                 # cast copy of h chunk
        )
    else:
        est = resident_est

    if vmem_limit_bytes is None:
        vmem_limit_bytes = min(max(int(est * 1.5) + (4 << 20), 32 << 20),
                               budget_cap)

    # ---- pad inputs --------------------------------------------------------
    if (M_pad, H_pad) != (M, H):
        x = jnp.pad(x, ((0, M_pad - M), (0, H_pad - H)))
    if (H_pad, I_pad) != (H, I):
        w1 = jnp.pad(w1, ((0, H_pad - H), (0, I_pad - I)))
        w2 = jnp.pad(w2, ((0, I_pad - I), (0, H_pad - H)))
    b1_2d = jnp.pad(b1, (0, I_pad - I)).reshape(1, I_pad)
    b2_2d = jnp.pad(b2, (0, H_pad - H)).reshape(1, H_pad)

    resident = dict(pipeline_mode=pl.Buffered(1))    # constant across grid

    # TODO(synk): cross-pallas_call weight prefetch (DMA semaphore futures) to
    # hide the weight-load prologue for small-M / decode-style calls.
    # TODO(synk): fp8 weight storage (per-channel scales folded into the f32
    # epilogue) on v7x to halve resident-weight VMEM.
    # TODO(synk): training-mode dropout via pltpu.prng_seed /
    # pltpu.stateful_bernoulli (identity here, eval mode).

    if not use_streaming:
        grid = (M_pad // tile_m,)
        kernel = functools.partial(_ffn_resident_kernel,
                                   approximate_gelu=approximate_gelu,
                                   precision=precision)
        out = pl.pallas_call(
            kernel,
            out_shape=jax.ShapeDtypeStruct((M_pad, H_pad), out_dtype),
            grid_spec=pltpu.PrefetchScalarGridSpec(
                num_scalar_prefetch=0,
                grid=grid,
                in_specs=[
                    pl.BlockSpec((tile_m, H_pad), lambda i: (i, 0)),           # x tile
                    pl.BlockSpec((H_pad, I_pad), lambda i: (0, 0), **resident),  # W1
                    pl.BlockSpec((1, I_pad), lambda i: (0, 0), **resident),      # b1
                    pl.BlockSpec((I_pad, H_pad), lambda i: (0, 0), **resident),  # W2
                    pl.BlockSpec((1, H_pad), lambda i: (0, 0), **resident),      # b2
                ],
                out_specs=pl.BlockSpec((tile_m, H_pad), lambda i: (i, 0)),
            ),
            compiler_params=pltpu.CompilerParams(
                dimension_semantics=("parallel",),
                vmem_limit_bytes=vmem_limit_bytes,
            ),
        )(x, w1, b1_2d, w2, b2_2d)
    else:
        grid = (M_pad // tile_m, I_pad // tile_i)
        kernel = functools.partial(_ffn_stream_kernel,
                                   approximate_gelu=approximate_gelu,
                                   precision=precision)
        out = pl.pallas_call(
            kernel,
            out_shape=jax.ShapeDtypeStruct((M_pad, H_pad), out_dtype),
            grid_spec=pltpu.PrefetchScalarGridSpec(
                num_scalar_prefetch=0,
                grid=grid,
                in_specs=[
                    pl.BlockSpec((tile_m, H_pad), lambda i, j: (i, 0)),   # x tile (re-used over j)
                    pl.BlockSpec((H_pad, tile_i), lambda i, j: (0, j)),   # W1 chunk (double-buffered)
                    pl.BlockSpec((1, tile_i), lambda i, j: (0, j)),       # b1 chunk
                    pl.BlockSpec((tile_i, H_pad), lambda i, j: (j, 0)),   # W2 chunk (double-buffered)
                    pl.BlockSpec((1, H_pad), lambda i, j: (0, 0), **resident),  # b2
                ],
                out_specs=pl.BlockSpec((tile_m, H_pad), lambda i, j: (i, 0)),
                scratch_shapes=[pltpu.VMEM((tile_m, H_pad), jnp.float32)],
            ),
            compiler_params=pltpu.CompilerParams(
                dimension_semantics=("parallel", "arbitrary"),
                vmem_limit_bytes=vmem_limit_bytes,
            ),
        )(x, w1, b1_2d, w2, b2_2d)

    return out[:M, :H].reshape(B, S, H)


def reference_ffn(hidden_states, w1, b1, w2, b2, *, approximate_gelu=True):
    h = jnp.dot(hidden_states, w1, precision=jax.lax.Precision.HIGHEST) + b1
    h = jax.nn.gelu(h, approximate=approximate_gelu)
    return jnp.dot(h, w2, precision=jax.lax.Precision.HIGHEST) + b2


if __name__ == "__main__":
    # Small config: hidden_size=32, intermediate_size=256, batch=2, seq=8
    B, S, H, I = 2, 8, 32, 256

    key = jax.random.PRNGKey(0)
    kx, kw1, kb1, kw2, kb2 = jax.random.split(key, 5)

    x = jax.random.normal(kx, (B, S, H), dtype=jnp.float32)
    # nn.Linear-style deterministic init (uniform in +/- 1/sqrt(fan_in)),
    # stored as (in_dim, out_dim) i.e. already transposed relative to torch.
    w1 = jax.random.uniform(kw1, (H, I), jnp.float32, -1.0 / H ** 0.5, 1.0 / H ** 0.5)
    b1 = jax.random.uniform(kb1, (I,), jnp.float32, -1.0 / H ** 0.5, 1.0 / H ** 0.5)
    w2 = jax.random.uniform(kw2, (I, H), jnp.float32, -1.0 / I ** 0.5, 1.0 / I ** 0.5)
    b2 = jax.random.uniform(kb2, (H,), jnp.float32, -1.0 / I ** 0.5, 1.0 / I ** 0.5)

    ref = reference_ffn(x, w1, b1, w2, b2)

    # Fast path: weights resident in VMEM (single-buffered).
    out = transformer_transducer_feed_forward(x, w1, b1, w2, b2)
    out = jax.block_until_ready(out)
    assert out.shape == (B, S, H)
    assert jnp.allclose(out, ref, atol=1e-4, rtol=1e-4), \
        f"resident path: max abs err {jnp.max(jnp.abs(out - ref))}"

    # Streaming fallback (exercised here to validate the large-weight path).
    out_s = transformer_transducer_feed_forward(
        x, w1, b1, w2, b2, force_streaming=True, tile_i=128)
    out_s = jax.block_until_ready(out_s)
    assert jnp.allclose(out_s, ref, atol=1e-4, rtol=1e-4), \
        f"streaming path: max abs err {jnp.max(jnp.abs(out_s - ref))}"

    print("KERNEL_OK")
</pallas_src>

<mosaic_0001>
module attributes {stable_mosaic.version = 11 : i64} {
  func.func @_ffn_resident_kernel(%arg0: i32, %arg1: memref<16x128xf32, #tpu.memory_space<vmem>>, %arg2: memref<128x256xf32, #tpu.memory_space<vmem>>, %arg3: memref<1x256xf32, #tpu.memory_space<vmem>>, %arg4: memref<256x128xf32, #tpu.memory_space<vmem>>, %arg5: memref<1x128xf32, #tpu.memory_space<vmem>>, %arg6: memref<16x128xf32, #tpu.memory_space<vmem>>) attributes {dimension_semantics = [#tpu.dimension_semantics<parallel>], iteration_bounds = array<i64: 1>, scalar_prefetch = 0 : i64, scratch_operands = 0 : i64, tpu.core_type = #tpu.core_type<tc>, window_params = [{transform_indices = @transform_0, window_bounds = array<i64: 16, 128>}, {pipeline_mode = #tpu.pipeline_mode<synchronous>, transform_indices = @transform_1, window_bounds = array<i64: 128, 256>}, {pipeline_mode = #tpu.pipeline_mode<synchronous>, transform_indices = @transform_2, window_bounds = array<i64: 1, 256>}, {pipeline_mode = #tpu.pipeline_mode<synchronous>, transform_indices = @transform_3, window_bounds = array<i64: 256, 128>}, {pipeline_mode = #tpu.pipeline_mode<synchronous>, transform_indices = @transform_4, window_bounds = array<i64: 1, 128>}, {transform_indices = @transform_5, window_bounds = array<i64: 16, 128>}]} {
    %c0 = arith.constant 0 : index
    %c0_0 = arith.constant 0 : index
    %0 = vector.load %arg1[%c0, %c0_0] : memref<16x128xf32, #tpu.memory_space<vmem>>, vector<16x128xf32>
    %c0_1 = arith.constant 0 : index
    %c0_2 = arith.constant 0 : index
    %1 = vector.load %arg2[%c0_1, %c0_2] : memref<128x256xf32, #tpu.memory_space<vmem>>, vector<128x256xf32>
    %cst = arith.constant dense<0.000000e+00> : vector<16x256xf32>
    %2 = tpu.matmul %0, %1, %cst {dimension_numbers = #tpu.dot_dimension_numbers<[1], [0], [0], [1], [0, 0, 1, 1], [], []>, precision = #tpu.contract_precision<fp32>} : vector<16x128xf32>, vector<128x256xf32>, vector<16x256xf32> -> vector<16x256xf32>
    %c0_3 = arith.constant 0 : index
    %c0_4 = arith.constant 0 : index
    %3 = vector.load %arg3[%c0_3, %c0_4] : memref<1x256xf32, #tpu.memory_space<vmem>>, vector<1x256xf32>
    %4 = vector.broadcast %3 : vector<1x256xf32> to vector<16x256xf32>
    %5 = arith.addf %2, %4 : vector<16x256xf32>
    %6 = arith.mulf %5, %5 : vector<16x256xf32>
    %7 = arith.mulf %5, %6 : vector<16x256xf32>
    %cst_5 = arith.constant 4.471500e-02 : f32
    %8 = vector.broadcast %cst_5 : f32 to vector<16x256xf32>
    %9 = arith.mulf %8, %7 : vector<16x256xf32>
    %10 = arith.addf %5, %9 : vector<16x256xf32>
    %cst_6 = arith.constant 0.797884583 : f32
    %11 = vector.broadcast %cst_6 : f32 to vector<16x256xf32>
    %12 = arith.mulf %11, %10 : vector<16x256xf32>
    %13 = math.tanh %12 : vector<16x256xf32>
    %cst_7 = arith.constant 1.000000e+00 : f32
    %14 = vector.broadcast %cst_7 : f32 to vector<16x256xf32>
    %15 = arith.addf %14, %13 : vector<16x256xf32>
    %cst_8 = arith.constant 5.000000e-01 : f32
    %16 = vector.broadcast %cst_8 : f32 to vector<16x256xf32>
    %17 = arith.mulf %16, %15 : vector<16x256xf32>
    %18 = arith.mulf %5, %17 : vector<16x256xf32>
    %c0_9 = arith.constant 0 : index
    %c0_10 = arith.constant 0 : index
    %19 = vector.load %arg4[%c0_9, %c0_10] : memref<256x128xf32, #tpu.memory_space<vmem>>, vector<256x128xf32>
    %cst_11 = arith.constant dense<0.000000e+00> : vector<16x128xf32>
    %20 = tpu.matmul %18, %19, %cst_11 {dimension_numbers = #tpu.dot_dimension_numbers<[1], [0], [0], [1], [0, 0, 1, 1], [], []>, precision = #tpu.contract_precision<fp32>} : vector<16x256xf32>, vector<256x128xf32>, vector<16x128xf32> -> vector<16x128xf32>
    %c0_12 = arith.constant 0 : index
    %c0_13 = arith.constant 0 : index
    %21 = vector.load %arg5[%c0_12, %c0_13] : memref<1x128xf32, #tpu.memory_space<vmem>>, vector<1x128xf32>
    %22 = vector.broadcast %21 : vector<1x128xf32> to vector<16x128xf32>
    %23 = arith.addf %20, %22 : vector<16x128xf32>
    %c0_14 = arith.constant 0 : index
    %c0_15 = arith.constant 0 : index
    %24 = vector.load %arg6[%c0_14, %c0_15] : memref<16x128xf32, #tpu.memory_space<vmem>>, vector<16x128xf32>
    tpu.vector_store %arg6[%c0_14, %c0_15], %23 {strides = array<i32>} : memref<16x128xf32, #tpu.memory_space<vmem>>, vector<16x128xf32>,
    return
  }
  func.func @transform_0(%arg0: i32) -> (i32, i32) {
    %c0_i32 = arith.constant 0 : i32
    %c0_i32_0 = arith.constant 0 : i32
    return %arg0, %c0_i32 : i32, i32
  }
  func.func @transform_1(%arg0: i32) -> (i32, i32) {
    %c0_i32 = arith.constant 0 : i32
    %c0_i32_0 = arith.constant 0 : i32
    %c0_i32_1 = arith.constant 0 : i32
    return %c0_i32, %c0_i32_0 : i32, i32
  }
  func.func @transform_2(%arg0: i32) -> (i32, i32) {
    %c0_i32 = arith.constant 0 : i32
    %c0_i32_0 = arith.constant 0 : i32
    %c0_i32_1 = arith.constant 0 : i32
    return %c0_i32, %c0_i32_0 : i32, i32
  }
  func.func @transform_3(%arg0: i32) -> (i32, i32) {
    %c0_i32 = arith.constant 0 : i32
    %c0_i32_0 = arith.constant 0 : i32
    %c0_i32_1 = arith.constant 0 : i32
    return %c0_i32, %c0_i32_0 : i32, i32
  }
  func.func @transform_4(%arg0: i32) -> (i32, i32) {
    %c0_i32 = arith.constant 0 : i32
    %c0_i32_0 = arith.constant 0 : i32
    %c0_i32_1 = arith.constant 0 : i32
    return %c0_i32, %c0_i32_0 : i32, i32
  }
  func.func @transform_5(%arg0: i32) -> (i32, i32) {
    %c0_i32 = arith.constant 0 : i32
    %c0_i32_0 = arith.constant 0 : i32
    return %arg0, %c0_i32 : i32, i32
  }
}

</mosaic_0001>

<bundles_post_ra>
// kernel: tpu_custom_call.1
= control target key start
LH: loop header
LB: loop body
LE: loop exit
PB: predicated region body
PF: predicated region fallthrough
CT: control target
= control target key end

     0   :  { %10 = vsyncpa [#allocation3], 0  ;;  %s3998_s0 = inlined_call_operand.hbm [shape: f32[16,128], index: 0, kind: input, shape index: {}]   ;;  %s3999_s1 = inlined_call_operand.hbm [shape: f32[128,256], index: 1, kind: input, shape index: {}]   ;;  %s4000_s2 = inlined_call_operand.vmem [shape: f32[1,256], index: 2, kind: input, shape index: {}]   ;;  %s4001_s3 = inlined_call_operand.hbm [shape: f32[256,128], index: 3, kind: input, shape index: {}]   ;;  %s4002_s4 = inlined_call_operand.vmem [shape: f32[1,128], index: 4, kind: input, shape index: {}]   ;;  %s4003_s5 = inlined_call_operand.hbm [shape: f32[16,128], index: 5, kind: output, shape index: {}]  }
   0x1   :  { %11 = vsyncpa [#allocation6], 0 }
   0x2   :  { %12 = vsyncpa [#allocation4], 0  ;;  %s2773_s18 = smov [#allocation5]   ;;  %s2679_s22 = scalar_lea.hbm %s3999_s1, 4096 }
   0x3   :  { %s30_s19 = sshll.u32 %s2773_s18, 4  ;;  %p2680_p0 = scmp.ne.s32.totalorder %s3999_s1, %s2679_s22  ;;  %s31_s19 = int_to_ptr.vmem [resolvable:$true] %s30_s19 }
   0x4   :  { %p2683_p1 = scmp.lt.u32.totalorder %s2679_s22, %s3999_s1 }
   0x6   :  { %p2685_p2 = pnand %p2683_p1, %p2680_p0 }
   0x8   :  { %2688 = shalt.err (!%p2685_p2)
}
   0x9   :  { %s2689_s27 = scalar_lea.vmem %s31_s19, 4096  ;;  %p2694_p4 = scmp.lt.s32.totalorder %s31_s19, %s31_s19 }
   0xa   :  { %p2690_p3 = scmp.ne.s32.totalorder %s31_s19, %s2689_s27  ;;  %p2695_p5 = scmp.lt.s32.totalorder %s2689_s27, %s2689_s27 }
   0xc   :  { %p2696_p6 = por %p2695_p5, %p2694_p4 }
   0xe   :  { %p2697_p7 = pnand %p2696_p6, %p2690_p3 }
  0x10   :  { %2700 = shalt.err (!%p2697_p7)
}
  0x11   :  { %s2774_s28 = smov 256   ;;  %s2775_s29 = smov 16  }
  0x12   :  { %36 = dma.hbm_to_vmem [thread:$0]  %s3999_s1, 4096, %s31_s19, [#allocation6], %s2774_s28, %s2774_s28, %s2775_s29  }
  0x13   :  { %s2776_s7 = smov [#allocation2]   ;;  %s2701_s11 = scalar_lea.hbm %s3998_s0, 256 }
  0x14   :  { %s18_s8 = sshll.u32 %s2776_s7, 4  ;;  %p2702_p8 = scmp.ne.s32.totalorder %s3998_s0, %s2701_s11  ;;  %s19_s8 = int_to_ptr.vmem [resolvable:$true] %s18_s8 }
  0x15   :  { %p2705_p9 = scmp.lt.u32.totalorder %s2701_s11, %s3998_s0 }
  0x17   :  { %p2707_p10 = pnand %p2705_p9, %p2702_p8 }
  0x19   :  { %2710 = shalt.err (!%p2707_p10)
}
  0x1a   :  { %s2711_s16 = scalar_lea.vmem %s19_s8, 256  ;;  %p2716_p12 = scmp.lt.s32.totalorder %s19_s8, %s19_s8 }
  0x1b   :  { %p2712_p11 = scmp.ne.s32.totalorder %s19_s8, %s2711_s16  ;;  %p2717_p13 = scmp.lt.s32.totalorder %s2711_s16, %s2711_s16 }
  0x1d   :  { %p2718_p0 = por %p2717_p13, %p2716_p12 }
  0x1f   :  { %p2719_p1 = pnand %p2718_p0, %p2712_p11 }
  0x21   :  { %2722 = shalt.err (!%p2719_p1)
}
  0x22   :  { %s2777_s1 = smov 128   ;;  %s2778_s17 = smov 8  }
  0x23   :  { %24 = dma.hbm_to_vmem [thread:$0]  %s3998_s0, 256, %s19_s8, [#allocation3], %s2777_s1, %s2777_s1, %s2778_s17  }
  0x24   :  { %s2779_s20 = smov [#allocation7]   ;;  %s2723_s24 = scalar_lea.hbm %s4001_s3, 4096 }
  0x25   :  { %s44_s21 = sshll.u32 %s2779_s20, 4  ;;  %p2724_p2 = scmp.ne.s32.totalorder %s4001_s3, %s2723_s24  ;;  %s45_s21 = int_to_ptr.vmem [resolvable:$true] %s44_s21 }
  0x26   :  { %p2727_p3 = scmp.lt.u32.totalorder %s2723_s24, %s4001_s3 }
  0x28   :  { %p2729_p4 = pnand %p2727_p3, %p2724_p2 }
  0x2a   :  { %2732 = shalt.err (!%p2729_p4)
}
  0x2b   :  { %s2733_s29 = scalar_lea.vmem %s45_s21, 4096  ;;  %p2738_p6 = scmp.lt.s32.totalorder %s45_s21, %s45_s21 }
  0x2c   :  { %p2734_p5 = scmp.ne.s32.totalorder %s45_s21, %s2733_s29  ;;  %p2739_p7 = scmp.lt.s32.totalorder %s2733_s29, %s2733_s29 }
  0x2e   :  { %p2740_p8 = por %p2739_p7, %p2738_p6 }
  0x30   :  { %p2741_p9 = pnand %p2740_p8, %p2734_p5 }
  0x32   :  { %2744 = shalt.err (!%p2741_p9)
}
  0x33   :  { %50 = dma.hbm_to_vmem [thread:$0]  %s4001_s3, 4096, %s45_s21, [#allocation6], %s2777_s1, %s2777_s1, %s2778_s17  }
  0x34   :  { %2767 = dma.done.wait [#allocation3], 256  }
  0x35   :  { %2768 = vsyncadd [#allocation3], 4294967040 }
  0x36   :  { %2769 = dma.done.wait [#allocation6], 8192  }
  0x37   :  { %2770 = vsyncadd [#allocation6], 4294959104  ;;  %v4006_v0 = vmov 0.0   ;;  %v65_v1 = vld [vmem:[#allocation5 + $0x8] sm:$0xff]  ;;  %v67_v2 = vld [vmem:[#allocation5 + $0x18] sm:$0xff] }
  0x38   :  { %204 = vmatprep.mubr.f32.mxu0 %v4006_v0  ;;  %v64_v3 = vld [vmem:[#allocation5] sm:$0xff]  ;;  %v108_v4 = vand.u32 4294901760, %v65_v1  ;;  %v112_v5 = vand.u32 4294901760, %v67_v2  ;;  %v66_v6 = vld [vmem:[#allocation5 + $0x10] sm:$0xff]  ;;  %v69_v8 = vld [vmem:[#allocation5 + $0x28] sm:$0xff] }
  0x39   :  { %v110_v7 = vand.u32 4294901760, %v64_v3  ;;  %v71_v9 = vld [vmem:[#allocation5 + $0x38] sm:$0xff]  ;;  %v114_v10 = vand.u32 4294901760, %v66_v6  ;;  %v116_v11 = vand.u32 4294901760, %v69_v8  ;;  %v68_v13 = vld [vmem:[#allocation5 + $0x20] sm:$0xff]  ;;  %v70_v14 = vld [vmem:[#allocation5 + $0x30] sm:$0xff] }
  0x3a   :  { %v120_v12 = vand.u32 4294901760, %v71_v9  ;;  %v73_v15 = vld [vmem:[#allocation5 + $0x48] sm:$0xff]  ;;  %v2855_v16 = vpack.c.bf16 %v112_v5, %v108_v4  ;;  %v75_v17 = vld [vmem:[#allocation5 + $0x58] sm:$0xff]  ;;  %v72_v18 = vld [vmem:[#allocation5 + $0x40] sm:$0xff]  ;;  %v118_v23 = vand.u32 4294901760, %v68_v13  ;;  %v122_v24 = vand.u32 4294901760, %v70_v14 }
  0x3b   :  { %v74_v19 = vld [vmem:[#allocation5 + $0x50] sm:$0xff]  ;;  %v2857_v20 = vpack.c.bf16 %v114_v10, %v110_v7  ;;  %v77_v22 = vld [vmem:[#allocation5 + $0x68] sm:$0xff]  ;;  %v124_v25 = vand.u32 4294901760, %v73_v15  ;;  %v128_v26 = vand.u32 4294901760, %v75_v17  ;;  %v126_v27 = vand.u32 4294901760, %v72_v18  ;;  %v79_v29 = vld [vmem:[#allocation5 + $0x78] sm:$0xff] }
  0x3c   :  { %4161 = vst [vmem:[#allocation12_spill] sm:$0xff] %v2855_v16  ;;  %v2859_v21 = vpack.c.bf16 %v120_v12, %v116_v11  ;;  %2255 = vmatprep.subr.bf16.mxu0 %v2855_v16  ;;  %v130_v28 = vand.u32 4294901760, %v74_v19  ;;  %v76_v30 = vld [vmem:[#allocation5 + $0x60] sm:$0xff]  ;;  %v2863_v31 = vsub.f32 %v65_v1, %v108_v4  ;;  %v2866_v32 = vpack.c.bf16 %v122_v24, %v118_v23  ;;  %v78_v34 = vld [vmem:[#allocation5 + $0x70] sm:$0xff]  ;;  %v81_v39 = vld [vmem:[#allocation5 + $0x88] sm:$0xff] }
  0x3d   :  { %4162 = vst [vmem:[#allocation13_spill] sm:$0xff] %v2857_v20  ;;  %2257 = vmatpush1.bf16.msra.mxu0 %v2857_v20  ;;  %v132_v33 = vand.u32 4294901760, %v77_v22  ;;  %v2868_v35 = vsub.f32 %v67_v2, %v112_v5  ;;  %v2870_v36 = vsub.f32 %v64_v3, %v110_v7  ;;  %v2872_v37 = vsub.f32 %v66_v6, %v114_v10  ;;  %v83_v40 = vld [vmem:[#allocation5 + $0x98] sm:$0xff]  ;;  %v80_v45 = vld [vmem:[#allocation5 + $0x80] sm:$0xff]  ;;  %v82_v46 = vld [vmem:[#allocation5 + $0x90] sm:$0xff] }
  0x3e   :  { %4163 = vst [vmem:[#allocation14_spill] sm:$0xff] %v2859_v21  ;;  %2259 = vmatprep.subr.bf16.mxu0 %v2859_v21  ;;  %4164 = vst [vmem:[#allocation15_spill] sm:$0xff] %v2866_v32  ;;  %v2874_v38 = vpack.c.bf16 %v128_v26, %v124_v25  ;;  %v2876_v41 = vsub.f32 %v69_v8, %v116_v11  ;;  %v2878_v42 = vsub.f32 %v71_v9, %v120_v12  ;;  %v85_v51 = vld [vmem:[#allocation5 + $0xa8] sm:$0xff]  ;;  %v87_v56 = vld [vmem:[#allocation5 + $0xb8] sm:$0xff] }
  0x3f   :  { %v136_v43 = vand.u32 4294901760, %v79_v29  ;;  %v134_v44 = vand.u32 4294901760, %v76_v30  ;;  %v2881_v47 = vsub.f32 %v68_v13, %v118_v23  ;;  %v2883_v48 = vsub.f32 %v70_v14, %v122_v24  ;;  %v84_v57 = vld [vmem:[#allocation5 + $0xa0] sm:$0xff]  ;;  %v86_v58 = vld [vmem:[#allocation5 + $0xb0] sm:$0xff]  ;;  %v89_v63 = vld [vmem:[#allocation5 + $0xc8] sm:$0xff] }
  0x40   :  { %4165 = vst [vmem:[#allocation16_spill] sm:$0xff] %v2874_v38  ;;  %v2885_v49 = vpack.c.bf16 %v130_v28, %v126_v27  ;;  %v138_v50 = vand.u32 4294901760, %v78_v34  ;;  %v2888_v52 = vsub.f32 %v73_v15, %v124_v25  ;;  %v140_v54 = vand.u32 4294901760, %v81_v39  ;;  %v91_v1 = vld [vmem:[#allocation5 + $0xd8] sm:$0xff]  ;;  %v88_v10 = vld [vmem:[#allocation5 + $0xc0] sm:$0xff]  ;;  %v90_v11 = vld [vmem:[#allocation5 + $0xd0] sm:$0xff] }
  0x41   :  { %2261 = vmatpush1.bf16.msra.mxu0 %v2866_v32  ;;  %v2890_v53 = vpack.c.bf16 %v136_v43, %v132_v33  ;;  %v144_v55 = vand.u32 4294901760, %v83_v40  ;;  %v2892_v59 = vsub.f32 %v75_v17, %v128_v26  ;;  %v2894_v60 = vsub.f32 %v72_v18, %v126_v27  ;;  %v62_v27 = vld [vmem:[#allocation2] sm:$0xff]  ;;  %v63_v20 = vld [vmem:[#allocation2 + $0x8] sm:$0xff] }
  0x42   :  { %4166 = vst [vmem:[#allocation17_spill] sm:$0xff] %v2885_v49  ;;  %2263 = vmatprep.subr.bf16.mxu0 %v2874_v38  ;;  %v142_v61 = vand.u32 4294901760, %v80_v45  ;;  %v146_v62 = vand.u32 4294901760, %v82_v46  ;;  %v2896_v2 = vsub.f32 %v74_v19, %v130_v28  ;;  %v2898_v3 = vsub.f32 %v77_v22, %v132_v33 }
  0x43   :  { %4167 = vst [vmem:[#allocation18_spill] sm:$0xff] %v2890_v53  ;;  %v2900_v4 = vsub.f32 %v79_v29, %v136_v43  ;;  %v2902_v5 = vpack.c.bf16 %v138_v50, %v134_v44  ;;  %v148_v6 = vand.u32 4294901760, %v85_v51  ;;  %v152_v7 = vand.u32 4294901760, %v87_v56 }
  0x44   :  { %v150_v8 = vand.u32 4294901760, %v84_v57  ;;  %v154_v9 = vand.u32 4294901760, %v86_v58  ;;  %v2906_v12 = vsub.f32 %v76_v30, %v134_v44  ;;  %v2908_v13 = vpack.c.bf16 %v144_v55, %v140_v54  ;;  %v93_v44 = vld [vmem:[#allocation5 + $0xe8] sm:$0xff] }
  0x45   :  { %4168 = vst [vmem:[#allocation19_spill] sm:$0xff] %v2902_v5  ;;  %2265 = vmatpush1.bf16.msra.mxu0 %v2885_v49  ;;  %v156_v14 = vand.u32 4294901760, %v89_v63  ;;  %v160_v15 = vand.u32 4294901760, %v91_v1  ;;  %v2910_v17 = vsub.f32 %v78_v34, %v138_v50  ;;  %v2912_v18 = vsub.f32 %v81_v39, %v140_v54 }
  0x46   :  { %2267 = vmatprep.subr.bf16.mxu0 %v2890_v53  ;;  %4169 = vst [vmem:[#allocation20_spill] sm:$0xff] %v2908_v13  ;;  %v2914_v19 = vsub.f32 %v83_v40, %v144_v55  ;;  %v2916_v22 = vpack.c.bf16 %v146_v62, %v142_v61  ;;  %v2918_v23 = vsub.f32 %v80_v45, %v142_v61  ;;  %v158_v25 = vand.u32 4294901760, %v88_v10  ;;  %v95_v45 = vld [vmem:[#allocation5 + $0xf8] sm:$0xff] }
  0x47   :  { %v2920_v24 = vsub.f32 %v82_v46, %v146_v62  ;;  %v162_v26 = vand.u32 4294901760, %v90_v11  ;;  %v2923_v28 = vpack.c.bf16 %v152_v7, %v148_v6  ;;  %v2925_v29 = vsub.f32 %v85_v51, %v148_v6  ;;  %v2940_v46 = vld [vmem:[#allocation5 + $0xe0] sm:$0xff]  ;;  %v2955_v62 = vld [vmem:[#allocation5 + $0xf0] sm:$0xff] }
  0x48   :  { %4170 = vst [vmem:[#allocation21_spill] sm:$0xff] %v2916_v22  ;;  %v2927_v30 = vsub.f32 %v87_v56, %v152_v7  ;;  %v2929_v33 = vpack.c.bf16 %v154_v9, %v150_v8  ;;  %v2932_v34 = vsub.f32 %v84_v57, %v150_v8  ;;  %v2934_v39 = vsub.f32 %v86_v58, %v154_v9 }
  0x49   :  { %2269 = vmatpush1.bf16.msra.mxu0 %v2902_v5  ;;  %4171 = vst [vmem:[#allocation22_spill] sm:$0xff] %v2923_v28  ;;  %v2936_v40 = vpack.c.bf16 %v160_v15, %v156_v14  ;;  %v2938_v43 = vsub.f32 %v89_v63, %v156_v14  ;;  %v4005_v50 = vand.u32 4294901760, %v2863_v31  ;;  %v4004_v51 = vand.u32 4294901760, %v2868_v35 }
  0x4a   :  { %4172 = vst [vmem:[#allocation23_spill] sm:$0xff] %v2929_v33  ;;  %2271 = vmatprep.subr.bf16.mxu0 %v2908_v13  ;;  %v2944_v54 = vand.u32 4294901760, %v62_v27  ;;  %v4008_v55 = vand.u32 4294901760, %v2870_v36  ;;  %v2947_v56 = vsub.f32 %v91_v1, %v160_v15  ;;  %v2949_v57 = vpack.c.bf16 %v162_v26, %v158_v25 }
  0x4b   :  { %4173 = vst [vmem:[#allocation24_spill] sm:$0xff] %v2936_v40  ;;  %v2951_v58 = vsub.f32 %v88_v10, %v158_v25  ;;  %v2953_v61 = vsub.f32 %v90_v11, %v162_v26  ;;  %v164_v63 = vand.u32 4294901760, %v93_v44  ;;  %v168_v6 = vand.u32 4294901760, %v95_v45 }
  0x4c   :  { %4174 = vst [vmem:[#allocation25_spill] sm:$0xff] %v2949_v57  ;;  %v230_v7 = vsub.f32 %v2863_v31, %v4005_v50  ;;  %v242_v1 = vsub.f32 %v2868_v35, %v4004_v51  ;;  %v2967_v9 = vsub.f32 %v62_v27, %v2944_v54  ;;  %v4009_v10 = vand.u32 4294901760, %v2872_v37 }
  0x4d   :  { %4175 = vst [vmem:[#allocation26_spill] sm:$0xff] %v2953_v61  ;;  %2273 = vmatpush1.bf16.msra.mxu0 %v2916_v22  ;;  %v4010_v11 = vand.u32 4294901760, %v2876_v41  ;;  %v236_v15 = vsub.f32 %v2870_v36, %v4008_v55  ;;  %v4013_v25 = vand.u32 4294901760, %v2878_v42  ;;  %v4018_v26 = vand.u32 4294901760, %v2881_v47 }
  0x4e   :  { %2275 = vmatprep.subr.bf16.mxu0 %v2923_v28  ;;  %4176 = vst [vmem:[#allocation27_spill] sm:$0xff] %v2967_v9  ;;  %v231_v51 = vand.u32 4294901760, %v230_v7  ;;  %v243_v50 = vand.u32 4294901760, %v242_v1  ;;  %v248_v27 = vsub.f32 %v2872_v37, %v4009_v10  ;;  %v4023_v1 = vand.u32 4294901760, %v2883_v48 }
  0x4f   :  { %v254_v14 = vsub.f32 %v2876_v41, %v4010_v11  ;;  %v266_v55 = vsub.f32 %v2878_v42, %v4013_v25  ;;  %v260_v7 = vsub.f32 %v2881_v47, %v4018_v26  ;;  %v2993_v0 = vpack.c.bf16 %v168_v6, %v164_v63 }
  0x50   :  { %v2995_v10 = vsub.f32 %v93_v44, %v164_v63  ;;  %v2997_v8 = vsub.f32 %v95_v45, %v168_v6  ;;  %v4181_v25 = vand.u32 4294901760, %v2955_v62  ;;  %v237_v22 = vand.u32 4294901760, %v236_v15 }
  0x51   :  { %2277 = vmatpush1.bf16.msra.mxu0 %v2929_v33  ;;  %4177 = vst [vmem:[#allocation28_spill] sm:$0xff] %v2993_v0  ;;  %v4180_v33 = vand.u32 4294901760, %v2940_v46  ;;  %v272_v26 = vsub.f32 %v2883_v48, %v4023_v1  ;;  %v2286_v13 = vpack.c.bf16 %v243_v50, %v231_v51  ;;  %v4183_v44 = vand.u32 4294901760, %v2967_v9 }
  0x52   :  { %2279 = vmatprep.subr.bf16.mxu0 %v2936_v40  ;;  %4178 = vst [vmem:[#allocation29_spill] sm:$0xff] %v2995_v10  ;;  %4179 = vst [vmem:[#allocation30_spill] sm:$0xff] %v2997_v8  ;;  %v4026_v40 = vand.u32 4294901760, %v2892_v59  ;;  %v249_v63 = vand.u32 4294901760, %v248_v27  ;;  %v255_v11 = vand.u32 4294901760, %v254_v14  ;;  %v4031_v15 = vand.u32 4294901760, %v2896_v2 }
  0x53   :  { %v3004_v28 = vpack.c.bf16 %v4181_v25, %v4180_v33  ;;  %v208_v45 = vsub.f32 %v2967_v9, %v4183_v44  ;;  %v267_v33 = vand.u32 4294901760, %v266_v55  ;;  %v261_v25 = vand.u32 4294901760, %v260_v7 }
  0x54   :  { %v4184_v1 = vand.u32 4294901760, %v2888_v52  ;;  %v290_v51 = vsub.f32 %v2892_v59, %v4026_v40  ;;  %v4036_v27 = vand.u32 4294901760, %v2898_v3  ;;  %v4037_v44 = vand.u32 4294901760, %v2900_v4 }
  0x55   :  { %4182 = vst [vmem:[#allocation31_spill] sm:$0xff] %v3004_v28  ;;  %2281 = vmatpush1.bf16.msra.mxu0 %v2949_v57  ;;  %v273_v6 = vand.u32 4294901760, %v272_v26  ;;  %v4185_v55 = vand.u32 4294901760, %v2894_v60  ;;  %v296_v7 = vsub.f32 %v2896_v2, %v4031_v15  ;;  %v4051_v26 = vand.u32 4294901760, %v2910_v17 }
  0x56   :  { %2283 = vmatprep.subr.bf16.mxu0 %v2993_v0  ;;  %v278_v50 = vsub.f32 %v2888_v52, %v4184_v1  ;;  %v4044_v0 = vand.u32 4294901760, %v2906_v12  ;;  %v209_v1 = vand.u32 4294901760, %v208_v45  ;;  %v302_v40 = vsub.f32 %v2898_v3, %v4036_v27 }
  0x57   :  { %v284_v14 = vsub.f32 %v2894_v60, %v4185_v55  ;;  %v314_v57 = vsub.f32 %v2900_v4, %v4037_v44  ;;  %v2288_v55 = vpack.c.bf16 %v249_v63, %v237_v22  ;;  %v2290_v5 = vpack.c.bf16 %v267_v33, %v255_v11 }
  0x58   :  { %v308_v15 = vsub.f32 %v2906_v12, %v4044_v0  ;;  %v4049_v45 = vand.u32 4294901760, %v2912_v18  ;;  %v279_v53 = vand.u32 4294901760, %v278_v50  ;;  %v291_v49 = vand.u32 4294901760, %v290_v51 }
  0x59   :  { %2285 = vmatpush1.bf16.msra.mxu0 %v3004_v28  ;;  %v320_v27 = vsub.f32 %v2910_v17, %v4051_v26  ;;  %v4047_v44 = vand.u32 4294901760, %v2914_v19  ;;  %v2292_v38 = vpack.c.bf16 %v273_v6, %v261_v25  ;;  %v285_v32 = vand.u32 4294901760, %v284_v14 }
  0x5a   :  { %2287 = vmatprep.subr.bf16.mxu0 %v2286_v13  ;;  %v297_v28 = vand.u32 4294901760, %v296_v7  ;;  %v4046_v22 = vand.u32 4294901760, %v2918_v23  ;;  %v303_v11 = vand.u32 4294901760, %v302_v40  ;;  %v315_v63 = vand.u32 4294901760, %v314_v57 }
  0x5b   :  { %v309_v33 = vand.u32 4294901760, %v308_v15  ;;  %v4045_v0 = vand.u32 4294901760, %v2920_v24  ;;  %v321_v13 = vand.u32 4294901760, %v320_v27  ;;  %v326_v50 = vsub.f32 %v2912_v18, %v4049_v45 }
  0x5c   :  { %210 = vmatmul.mubr.f32.vlgmr.msra.gmra.mrb[0].mxu0 %v209_v1  ;;  %v4048_v51 = vand.u32 4294901760, %v2925_v29  ;;  %v4050_v6 = vand.u32 4294901760, %v2927_v30  ;;  %v4186_v25 = vmov 0.0   ;;  %v2294_v14 = vpack.c.bf16 %v291_v49, %v279_v53 }
  0x5d   :  { %2289 = vmatpush1.bf16.msra.mxu0 %v2288_v55  ;;  %215 = vmatprep.mubr.f32.mxu0 %v4186_v25  ;;  %v338_v40 = vsub.f32 %v2914_v19, %v4047_v44  ;;  %v332_v57 = vsub.f32 %v2918_v23, %v4046_v22  ;;  %v344_v15 = vsub.f32 %v2920_v24, %v4045_v0  ;;  %v4187_v27 = vand.u32 4294901760, %v2940_v46 }
  0x5e   :  { %2291 = vmatprep.subr.bf16.mxu0 %v2290_v5  ;;  %v350_v49 = vsub.f32 %v2925_v29, %v4048_v51  ;;  %v362_v53 = vsub.f32 %v2927_v30, %v4050_v6  ;;  %v4188_v1 = vand.u32 4294901760, %v2955_v62  ;;  %v2296_v0 = vpack.c.bf16 %v297_v28, %v285_v32 }
  0x5f   :  { %v3068_v7 = vsub.f32 %v2940_v46, %v4187_v27  ;;  %v4058_v22 = vand.u32 4294901760, %v2934_v39  ;;  %v4056_v46 = vand.u32 4294901760, %v2938_v43  ;;  %v2298_v27 = vpack.c.bf16 %v315_v63, %v303_v11 }
  0x60   :  { %v3080_v55 = vsub.f32 %v2955_v62, %v4188_v1  ;;  %v2300_v44 = vpack.c.bf16 %v321_v13, %v309_v33  ;;  %v327_v51 = vand.u32 4294901760, %v326_v50  ;;  %v4057_v45 = vand.u32 4294901760, %v2947_v56 }
  0x61   :  { %2293 = vmatpush1.bf16.msra.mxu0 %v2292_v38  ;;  %v339_v6 = vand.u32 4294901760, %v338_v40  ;;  %v333_v26 = vand.u32 4294901760, %v332_v57  ;;  %v345_v5 = vand.u32 4294901760, %v344_v15  ;;  %v4059_v21 = vand.u32 4294901760, %v2951_v58 }
  0x62   :  { %2295 = vmatprep.subr.bf16.mxu0 %v2294_v14  ;;  %v351_v62 = vand.u32 4294901760, %v350_v49  ;;  %v363_v1 = vand.u32 4294901760, %v362_v53  ;;  %v4189_v32 = vand.u32 4294901760, %v2932_v34  ;;  %v391_v38 = vand.u32 4294901760, %v2953_v61 }
  0x63   :  { %v368_v11 = vsub.f32 %v2934_v39, %v4058_v22  ;;  %v374_v63 = vsub.f32 %v2938_v43, %v4056_v46  ;;  %v397_v33 = vand.u32 4294901760, %v2995_v10  ;;  %v409_v13 = vand.u32 4294901760, %v2997_v8 }
  0x64   :  { %v356_v28 = vsub.f32 %v2932_v34, %v4189_v32  ;;  %v386_v50 = vsub.f32 %v2947_v56, %v4057_v45  ;;  %v380_v14 = vsub.f32 %v2951_v58, %v4059_v21  ;;  %v392_v40 = vsub.f32 %v2953_v61, %v391_v38 }
  0x65   :  { %2297 = vmatpush1.bf16.msra.mxu0 %v2296_v0  ;;  %v3105_v57 = vand.u32 4294901760, %v63_v20  ;;  %v2302_v15 = vpack.c.bf16 %v339_v6, %v327_v51  ;;  %v398_v49 = vsub.f32 %v2995_v10, %v397_v33  ;;  %v410_v53 = vsub.f32 %v2997_v8, %v409_v13 }
  0x66   :  { %2299 = vmatprep.subr.bf16.mxu0 %v2298_v27  ;;  %v403_v0 = vand.u32 4294901760, %v3068_v7  ;;  %v2304_v32 = vpack.c.bf16 %v345_v5, %v333_v26  ;;  %v415_v45 = vand.u32 4294901760, %v3080_v55  ;;  %v2306_v22 = vpack.c.bf16 %v363_v1, %v351_v62 }
  0x67   :  { %v3111_v46 = vsub.f32 %v63_v20, %v3105_v57  ;;  %v357_v21 = vand.u32 4294901760, %v356_v28  ;;  %v369_v9 = vand.u32 4294901760, %v368_v11  ;;  %v375_v16 = vand.u32 4294901760, %v374_v63 }
  0x68   :  { %v387_v61 = vand.u32 4294901760, %v386_v50  ;;  %v381_v27 = vand.u32 4294901760, %v380_v14  ;;  %v393_v51 = vand.u32 4294901760, %v392_v40  ;;  %v399_v8 = vand.u32 4294901760, %v398_v49 }
  0x69   :  { %2301 = vmatpush1.bf16.msra.mxu0 %v2300_v44  ;;  %v4067_v6 = vand.u32 4294901760, %v3111_v46  ;;  %v411_v10 = vand.u32 4294901760, %v410_v53  ;;  %v404_v26 = vsub.f32 %v3068_v7, %v403_v0  ;;  %v416_v20 = vsub.f32 %v3080_v55, %v415_v45 }
  0x6a   :  { %2303 = vmatprep.subr.bf16.mxu0 %v2302_v15  ;;  %v2308_v62 = vpack.c.bf16 %v369_v9, %v357_v21  ;;  %v2310_v1 = vpack.c.bf16 %v387_v61, %v375_v16  ;;  %v2312_v28 = vpack.c.bf16 %v393_v51, %v381_v27  ;;  %v4190_v14 = vand.u32 4294901760, %v2863_v31 }
  0x6b   :  { %v219_v5 = vsub.f32 %v3111_v46, %v4067_v6  ;;  %v2314_v11 = vpack.c.bf16 %v411_v10, %v399_v8  ;;  %v405_v63 = vand.u32 4294901760, %v404_v26  ;;  %v417_v50 = vand.u32 4294901760, %v416_v20 }
  0x6c   :  { %v4191_v40 = vand.u32 4294901760, %v2868_v35  ;;  %v4192_v49 = vand.u32 4294901760, %v2870_v36  ;;  %v4193_v53 = vand.u32 4294901760, %v2872_v37  ;;  %v4194_v16 = vand.u32 4294901760, %v2876_v41 }
  0x6d   :  { %2305 = vmatpush1.bf16.msra.mxu0 %v2304_v32  ;;  %v220_v44 = vand.u32 4294901760, %v219_v5  ;;  %v4195_v21 = vand.u32 4294901760, %v2878_v42  ;;  %v4196_v8 = vand.u32 4294901760, %v2881_v47  ;;  %v4197_v9 = vand.u32 4294901760, %v2883_v48 }
  0x6e   :  { %2307 = vmatprep.subr.bf16.mxu0 %v2306_v22  ;;  %v3124_v15 = vpack.c.bf16 %v4191_v40, %v4190_v14  ;;  %v3130_v32 = vpack.c.bf16 %v4193_v53, %v4192_v49  ;;  %v4198_v22 = vand.u32 4294901760, %v2888_v52  ;;  %v4199_v27 = vand.u32 4294901760, %v2892_v59 }
  0x6f   :  { %221 = vmatmul.mubr.f32.gmra.mrb[2].mxu0 %v220_v44  ;;  %v3136_v61 = vpack.c.bf16 %v4195_v21, %v4194_v16  ;;  %v3142_v10 = vpack.c.bf16 %v4197_v9, %v4196_v8  ;;  %v4200_v26 = vand.u32 4294901760, %v2894_v60  ;;  %v4201_v20 = vand.u32 4294901760, %v2896_v2 }
  0x70   :  { %451 = vmatprep.mubr.f32.mxu0 %v4186_v25  ;;  %v3149_v51 = vpack.c.bf16 %v4199_v27, %v4198_v22  ;;  %v4202_v44 = vand.u32 4294901760, %v2898_v3  ;;  %v4203_v14 = vand.u32 4294901760, %v2900_v4  ;;  %v4204_v49 = vand.u32 4294901760, %v2906_v12 }
  0x71   :  { %v3155_v5 = vpack.c.bf16 %v4201_v20, %v4200_v26  ;;  %v4205_v53 = vand.u32 4294901760, %v2910_v17  ;;  %2309 = vmatpush1.bf16.msra.mxu0 %v2308_v62  ;;  %v4206_v21 = vand.u32 4294901760, %v2912_v18  ;;  %v4207_v8 = vand.u32 4294901760, %v2914_v19 }
  0x72   :  { %v3161_v40 = vpack.c.bf16 %v4203_v14, %v4202_v44  ;;  %v4208_v22 = vand.u32 4294901760, %v2918_v23  ;;  %v4209_v27 = vand.u32 4294901760, %v2920_v24  ;;  %v4211_v20 = vand.u32 4294901760, %v2925_v29  ;;  %2311 = vmatprep.subr.bf16.mxu0 %v2310_v1 }
  0x73   :  { %v3167_v16 = vpack.c.bf16 %v4205_v53, %v4204_v49  ;;  %v3173_v9 = vpack.c.bf16 %v4207_v8, %v4206_v21  ;;  %v4212_v44 = vand.u32 4294901760, %v2927_v30  ;;  %v4213_v62 = vand.u32 4294901760, %v2932_v34 }
  0x74   :  { %v3179_v26 = vpack.c.bf16 %v4209_v27, %v4208_v22  ;;  %v4214_v49 = vand.u32 4294901760, %v2934_v39  ;;  %v4215_v21 = vand.u32 4294901760, %v2938_v43  ;;  %v4216_v8 = vand.u32 4294901760, %v2947_v56 }
  0x75   :  { %v3185_v14 = vpack.c.bf16 %v4212_v44, %v4211_v20  ;;  %v4217_v22 = vand.u32 4294901760, %v2951_v58  ;;  %v3205_v20 = vpack.c.bf16 %v415_v45, %v403_v0  ;;  %2313 = vmatpush1.bf16.msra.mxu0 %v2312_v28  ;;  %v2316_v44 = vpack.c.bf16 %v417_v50, %v405_v63 }
  0x76   :  { %4210 = vst [vmem:[#allocation32_spill] sm:$0xff] %v3179_v26  ;;  %v3191_v53 = vpack.c.bf16 %v4214_v49, %v4213_v62  ;;  %v3197_v6 = vpack.c.bf16 %v4216_v8, %v4215_v21  ;;  %v3203_v26 = vpack.c.bf16 %v409_v13, %v397_v33  ;;  %2315 = vmatprep.subr.bf16.mxu0 %v2314_v11  ;;  %v4236_v33 = vld [vmem:[#allocation28_spill] sm:$0xff]  ;;  %v4237_v13 = vld [vmem:[#allocation31_spill] sm:$0xff]  ;;  %v4239_v28 = vand.u32 4294901760, %v3111_v46  ;;  %v3358_v8 = vld [vmem:[#allocation7 + $0xa0] sm:$0xff] }
  0x77   :  { %v3201_v27 = vpack.c.bf16 %v391_v38, %v4217_v22  ;;  %v2318_v1 = vpack.c.bf16 %v2868_v35, %v2863_v31  ;;  %v2320_v62 = vpack.c.bf16 %v2872_v37, %v2870_v36  ;;  %v2322_v49 = vpack.c.bf16 %v2878_v42, %v2876_v41  ;;  %v4235_v38 = vld [vmem:[#allocation25_spill] sm:$0xff]  ;;  %v3360_v22 = vld [vmem:[#allocation7 + $0xa8] sm:$0xff] }
  0x78   :  { %v2324_v45 = vpack.c.bf16 %v2883_v48, %v2881_v47  ;;  %v2326_v31 = vpack.c.bf16 %v2892_v59, %v2888_v52  ;;  %v2328_v35 = vpack.c.bf16 %v2896_v2, %v2894_v60  ;;  %v2330_v36 = vpack.c.bf16 %v2900_v4, %v2898_v3  ;;  %v4218_v59 = vld [vmem:[#allocation26_spill] sm:$0xff]  ;;  %v4219_v2 = vld [vmem:[#allocation29_spill] sm:$0xff] }
  0x79   :  { %2317 = vmatpush1.bf16.msra.mxu0 %v2316_v44  ;;  %v2332_v37 = vpack.c.bf16 %v2910_v17, %v2906_v12  ;;  %v2334_v41 = vpack.c.bf16 %v2914_v19, %v2912_v18  ;;  %v2336_v42 = vpack.c.bf16 %v2920_v24, %v2918_v23  ;;  %v2338_v47 = vpack.c.bf16 %v2927_v30, %v2925_v29  ;;  %v4220_v3 = vld [vmem:[#allocation30_spill] sm:$0xff]  ;;  %v4221_v17 = vld [vmem:[#allocation12_spill] sm:$0xff]  ;;  %v4222_v18 = vld [vmem:[#allocation27_spill] sm:$0xff] }
  0x7a   :  { %2319 = vmatprep.subr.bf16.mxu0 %v2318_v1  ;;  %v2340_v48 = vpack.c.bf16 %v2934_v39, %v2932_v34  ;;  %v2342_v52 = vpack.c.bf16 %v2947_v56, %v2938_v43  ;;  %v2344_v60 = vpack.c.bf16 %v4218_v59, %v2951_v58  ;;  %v2346_v4 = vpack.c.bf16 %v4220_v3, %v4219_v2  ;;  %v4223_v19 = vld [vmem:[#allocation13_spill] sm:$0xff]  ;;  %v4224_v23 = vld [vmem:[#allocation14_spill] sm:$0xff]  ;;  %v4225_v24 = vld [vmem:[#allocation15_spill] sm:$0xff] }
  0x7b   :  { %v2348_v12 = vpack.c.bf16 %v3080_v55, %v3068_v7  ;;  %v4226_v29 = vld [vmem:[#allocation16_spill] sm:$0xff]  ;;  %v4227_v30 = vld [vmem:[#allocation17_spill] sm:$0xff]  ;;  %v4228_v34 = vld [vmem:[#allocation18_spill] sm:$0xff]  ;;  %v4238_v0 = vand.u32 4294901760, %v4222_v18 }
  0x7c   :  { %453 = vmatmul.mubr.f32.vlgmr.msra.gmra.mrb[0].mxu0 %v2944_v54  ;;  %v4229_v39 = vld [vmem:[#allocation19_spill] sm:$0xff]  ;;  %v4230_v43 = vld [vmem:[#allocation20_spill] sm:$0xff]  ;;  %v4231_v56 = vld [vmem:[#allocation21_spill] sm:$0xff] }
  0x7d   :  { %2321 = vmatpush1.bf16.msra.mxu0 %v2320_v62  ;;  %458 = vmatprep.mubr.f32.mxu0 %v4186_v25  ;;  %v4232_v58 = vld [vmem:[#allocation22_spill] sm:$0xff]  ;;  %v4233_v7 = vld [vmem:[#allocation23_spill] sm:$0xff]  ;;  %v4234_v55 = vld [vmem:[#allocation24_spill] sm:$0xff] }
  0x7e   :  { %2323 = vmatprep.subr.bf16.mxu0 %v2322_v49  ;;  %v4240_v11 = vld [vmem:[#allocation32_spill] sm:$0xff]  ;;  %v3365_v44 = vld [vmem:[#allocation7 + $0x20] sm:$0xff]  ;;  %v3367_v1 = vld [vmem:[#allocation7 + $0x28] sm:$0xff] }
  0x7f   :  { %v4075_v62 = vand.u32 4294901760, %v3365_v44  ;;  %v4074_v49 = vand.u32 4294901760, %v3367_v1  ;;  %v3410_v2 = vld [vmem:[#allocation7 + $0xc0] sm:$0xff]  ;;  %v3412_v3 = vld [vmem:[#allocation7 + $0xc8] sm:$0xff] }
  0x80   :  { %460 = vmatmul.mubr.f32.gmra.mrb[2].mxu0 %v3105_v57 }
  0x81   :  { %2325 = vmatpush1.bf16.msra.mxu0 %v2324_v45  ;;  %594 = vmatprep.mubr.f32.mxu0 %v4186_v25 }
  0x82   :  { %2327 = vmatprep.subr.bf16.mxu0 %v2326_v31  ;;  %v3382_v31 = vpack.c.bf16 %v4074_v49, %v4075_v62 }
  0x84   :  { %4246 = vst [vmem:[#allocation13_spill] sm:$0xff] %v3382_v31 }
  0x85   :  { %2329 = vmatpush1.bf16.msra.mxu0 %v2328_v35  ;;  %v3384_v35 = vld [vmem:[#allocation7 + $0xb0] sm:$0xff] }
  0x86   :  { %2331 = vmatprep.subr.bf16.mxu0 %v2330_v36  ;;  %v3386_v36 = vld [vmem:[#allocation7 + $0xb8] sm:$0xff] }
  0x89   :  { %2333 = vmatpush1.bf16.msra.mxu0 %v2332_v37  ;;  %v4073_v37 = vand.u32 4294901760, %v3384_v35 }
  0x8a   :  { %2335 = vmatprep.subr.bf16.mxu0 %v2334_v41  ;;  %v4072_v41 = vand.u32 4294901760, %v3386_v36 }
  0x8c   :  { %v3402_v59 = vpack.c.bf16 %v4072_v41, %v4073_v37 }
  0x8d   :  { %2337 = vmatpush1.bf16.msra.mxu0 %v2336_v42  ;;  %v3391_v42 = vld [vmem:[#allocation7 + $0x30] sm:$0xff] }
  0x8e   :  { %2339 = vmatprep.subr.bf16.mxu0 %v2338_v47  ;;  %v3393_v47 = vld [vmem:[#allocation7 + $0x38] sm:$0xff]  ;;  %4247 = vst [vmem:[#allocation14_spill] sm:$0xff] %v3402_v59 }
  0x91   :  { %2341 = vmatpush1.bf16.msra.mxu0 %v2340_v48  ;;  %v4071_v48 = vand.u32 4294901760, %v3391_v42 }
  0x92   :  { %2343 = vmatprep.subr.bf16.mxu0 %v2342_v52  ;;  %v4070_v52 = vand.u32 4294901760, %v3393_v47 }
  0x95   :  { %2345 = vmatpush1.bf16.msra.mxu0 %v2344_v60  ;;  %v3408_v60 = vpack.c.bf16 %v4070_v52, %v4071_v48 }
  0x96   :  { %2347 = vmatprep.subr.bf16.mxu0 %v2346_v4  ;;  %v4069_v4 = vand.u32 4294901760, %v3410_v2 }
  0x97   :  { %4248 = vst [vmem:[#allocation15_spill] sm:$0xff] %v3408_v60 }
  0x99   :  { %2349 = vmatpush1.bf16.msra.mxu0 %v2348_v12  ;;  %v4068_v12 = vand.u32 4294901760, %v3412_v3 }
  0x9a   :  { %2351 = vmatprep.subr.bf16.mxu0 %v4221_v17 }
  0x9c   :  { %597 = vmatmul.mubr.f32.vlgmr.msra.gmra.mrb[0].mxu0 %v4222_v18  ;;  %v3419_v18 = vld [vmem:[#allocation7 + $0x48] sm:$0xff] }
  0x9d   :  { %2353 = vmatpush1.bf16.msra.mxu0 %v4223_v19  ;;  %602 = vmatprep.mubr.f32.mxu0 %v4186_v25 }
  0x9e   :  { %2355 = vmatprep.subr.bf16.mxu0 %v4224_v23 }
  0xa0   :  { %605 = vmatmul.mubr.f32.gmra.mrb[2].mxu0 %v3111_v46  ;;  %v3308_v46 = vld [vmem:[#allocation7 + $0x80] sm:$0xff] }
  0xa1   :  { %2357 = vmatpush1.bf16.msra.mxu0 %v4225_v24  ;;  %707 = vmatprep.mubr.f32.mxu0 %v4186_v25  ;;  %v1136_v63 = vand.u32 4294901760, %v3308_v46 }
  0xa2   :  { %2359 = vmatprep.subr.bf16.mxu0 %v4226_v29 }
  0xa3   :  { %v3443_v41 = vsub.f32 %v3308_v46, %v1136_v63  ;;  %v1078_v46 = vld [vmem:[#allocation7 + $0xf0] sm:$0xff] }
  0xa5   :  { %2361 = vmatpush1.bf16.msra.mxu0 %v4227_v30 }
  0xa6   :  { %2363 = vmatprep.subr.bf16.mxu0 %v4228_v34 }
  0xa9   :  { %2365 = vmatpush1.bf16.msra.mxu0 %v4229_v39 }
  0xaa   :  { %2367 = vmatprep.subr.bf16.mxu0 %v4230_v43 }
  0xad   :  { %2369 = vmatpush1.bf16.msra.mxu0 %v4231_v56 }
  0xae   :  { %2371 = vmatprep.subr.bf16.mxu0 %v4232_v58 }
  0xb1   :  { %2373 = vmatpush1.bf16.msra.mxu0 %v4233_v7 }
  0xb2   :  { %2375 = vmatprep.subr.bf16.mxu0 %v4234_v55 }
  0xb5   :  { %2377 = vmatpush1.bf16.msra.mxu0 %v4235_v38 }
  0xb6   :  { %2379 = vmatprep.subr.bf16.mxu0 %v4236_v33 }
  0xb9   :  { %2381 = vmatpush1.bf16.msra.mxu0 %v4237_v13 }
  0xba   :  { %2383 = vmatprep.subr.bf16.mxu0 %v3124_v15  ;;  %v3314_v15 = vld [vmem:[#allocation7] sm:$0xff] }
  0xbc   :  { %711 = vmatmul.mubr.f32.vlgmr.msra.gmra.mrb[0].mxu0 %v4238_v0  ;;  %v1077_v0 = vld [vmem:[#allocation7 + $0xe8] sm:$0xff] }
  0xbd   :  { %2385 = vmatpush1.bf16.msra.mxu0 %v3130_v32  ;;  %716 = vmatprep.mubr.f32.mxu0 %v4186_v25  ;;  %v3316_v32 = vld [vmem:[#allocation7 + $0x8] sm:$0xff] }
  0xbe   :  { %2387 = vmatprep.subr.bf16.mxu0 %v3136_v61  ;;  %v1088_v61 = vand.u32 4294901760, %v3314_v15 }
  0xc0   :  { %720 = vmatmul.mubr.f32.gmra.mrb[2].mxu0 %v4239_v28  ;;  %v3455_v62 = vsub.f32 %v3314_v15, %v1088_v61 }
  0xc1   :  { %2389 = vmatpush1.bf16.msra.mxu0 %v3142_v10  ;;  %886 = vmatprep.mubr.f32.mxu0 %v4186_v25  ;;  %v3332_v10 = vld [vmem:[#allocation7 + $0x90] sm:$0xff] }
  0xc2   :  { %2391 = vmatprep.subr.bf16.mxu0 %v3149_v51  ;;  %v3334_v51 = vld [vmem:[#allocation7 + $0x98] sm:$0xff] }
  0xc5   :  { %2393 = vmatpush1.bf16.msra.mxu0 %v3155_v5  ;;  %v4081_v5 = vand.u32 4294901760, %v3332_v10 }
  0xc6   :  { %2395 = vmatprep.subr.bf16.mxu0 %v3161_v40  ;;  %v4080_v40 = vand.u32 4294901760, %v3334_v51 }
  0xc9   :  { %2397 = vmatpush1.bf16.msra.mxu0 %v3167_v16  ;;  %v3339_v16 = vld [vmem:[#allocation7 + $0x10] sm:$0xff] }
  0xca   :  { %2399 = vmatprep.subr.bf16.mxu0 %v3173_v9  ;;  %v3341_v9 = vld [vmem:[#allocation7 + $0x18] sm:$0xff]  ;;  %v4257_v15 = vand.u32 4294901760, %v3339_v16 }
  0xcd   :  { %2401 = vmatpush1.bf16.msra.mxu0 %v4240_v11  ;;  %v1175_v11 = vand.u32 4294901760, %v1077_v0 }
  0xce   :  { %2403 = vmatprep.subr.bf16.mxu0 %v3185_v14  ;;  %v4078_v14 = vand.u32 4294901760, %v3341_v9 }
  0xd1   :  { %2405 = vmatpush1.bf16.msra.mxu0 %v3191_v53  ;;  %v3350_v53 = vpack.c.bf16 %v4080_v40, %v4081_v5  ;;  %v3483_v40 = vsub.f32 %v3339_v16, %v4257_v15  ;;  %v4262_v15 = vand.u32 4294901760, %v3367_v1 }
  0xd2   :  { %2407 = vmatprep.subr.bf16.mxu0 %v3197_v6  ;;  %v3310_v6 = vld [vmem:[#allocation7 + $0x88] sm:$0xff] }
  0xd3   :  { %v1139_v50 = vand.u32 4294901760, %v3310_v6  ;;  %4243 = vst [vmem:[#allocation30_spill] sm:$0xff] %v3350_v53 }
  0xd5   :  { %2409 = vmatpush1.bf16.msra.mxu0 %v3201_v27  ;;  %v4077_v27 = vand.u32 4294901760, %v3358_v8  ;;  %v3448_v37 = vsub.f32 %v3310_v6, %v1139_v50  ;;  %v1178_v6 = vand.u32 4294901760, %v1078_v46 }
  0xd6   :  { %2411 = vmatprep.subr.bf16.mxu0 %v3203_v26  ;;  %v4079_v26 = vand.u32 4294901760, %v3339_v16 }
  0xd8   :  { %v3356_v21 = vpack.c.bf16 %v4078_v14, %v4079_v26  ;;  %v1062_v14 = vld [vmem:[#allocation7 + $0x70] sm:$0xff]  ;;  %v1063_v26 = vld [vmem:[#allocation7 + $0x78] sm:$0xff] }
  0xd9   :  { %2413 = vmatpush1.bf16.msra.mxu0 %v3205_v20  ;;  %v4076_v20 = vand.u32 4294901760, %v3360_v22  ;;  %v1133_v5 = vand.u32 4294901760, %v1063_v26 }
  0xda   :  { %2415 = vmatprep.subr.bf16.mxu0 %v4221_v17  ;;  %4244 = vst [vmem:[#allocation12_spill] sm:$0xff] %v3356_v21  ;;  %v3417_v17 = vld [vmem:[#allocation7 + $0x40] sm:$0xff] }
  0xdb   :  { %v3376_v45 = vpack.c.bf16 %v4076_v20, %v4077_v27 }
  0xdc   :  { %888 = vmatmul.mubr.f32.vlgmr.msra.gmra.mrb[0].mxu0 %v2944_v54 }
  0xdd   :  { %2417 = vmatpush1.bf16.msra.mxu0 %v4223_v19  ;;  %893 = vmatprep.mubr.f32.mxu0 %v4186_v25  ;;  %4245 = vst [vmem:[#allocation27_spill] sm:$0xff] %v3376_v45  ;;  %v1112_v19 = vand.u32 4294901760, %v3417_v17 }
  0xde   :  { %2419 = vmatprep.subr.bf16.mxu0 %v4224_v23  ;;  %v1115_v23 = vand.u32 4294901760, %v3419_v18 }
  0xe0   :  { %895 = vmatmul.mubr.f32.gmra.mrb[2].mxu0 %v3105_v57 }
  0xe1   :  { %2421 = vmatpush1.bf16.msra.mxu0 %v4225_v24  ;;  %997 = vmatprep.mubr.f32.mxu0 %v4186_v25  ;;  %v3428_v24 = vpack.c.bf16 %v4068_v12, %v4069_v4  ;;  %v1060_v12 = vld [vmem:[#allocation7 + $0x60] sm:$0xff]  ;;  %v1061_v4 = vld [vmem:[#allocation7 + $0x68] sm:$0xff] }
  0xe2   :  { %2423 = vmatprep.subr.bf16.mxu0 %v4226_v29  ;;  %v3430_v29 = vpack.c.bf16 %v1115_v23, %v1112_v19  ;;  %v1124_v52 = vand.u32 4294901760, %v1060_v12  ;;  %v1127_v48 = vand.u32 4294901760, %v1061_v4 }
  0xe3   :  { %4249 = vst [vmem:[#allocation16_spill] sm:$0xff] %v3428_v24 }
  0xe4   :  { %4250 = vst [vmem:[#allocation17_spill] sm:$0xff] %v3430_v29  ;;  %v3462_v27 = vpack.c.bf16 %v1127_v48, %v1124_v52 }
  0xe5   :  { %2425 = vmatpush1.bf16.msra.mxu0 %v4227_v30  ;;  %v1074_v30 = vld [vmem:[#allocation7 + $0xd0] sm:$0xff] }
  0xe6   :  { %2427 = vmatprep.subr.bf16.mxu0 %v4228_v34  ;;  %v1075_v34 = vld [vmem:[#allocation7 + $0xd8] sm:$0xff]  ;;  %4254 = vst [vmem:[#allocation21_spill] sm:$0xff] %v3462_v27 }
  0xe9   :  { %2429 = vmatpush1.bf16.msra.mxu0 %v4229_v39  ;;  %v1166_v39 = vand.u32 4294901760, %v1074_v30 }
  0xea   :  { %2431 = vmatprep.subr.bf16.mxu0 %v4230_v43  ;;  %v1169_v43 = vand.u32 4294901760, %v1075_v34 }
  0xed   :  { %2433 = vmatpush1.bf16.msra.mxu0 %v4231_v56  ;;  %v1058_v56 = vld [vmem:[#allocation7 + $0x50] sm:$0xff] }
  0xee   :  { %2435 = vmatprep.subr.bf16.mxu0 %v4232_v58  ;;  %v1059_v58 = vld [vmem:[#allocation7 + $0x58] sm:$0xff] }
  0xf1   :  { %2437 = vmatpush1.bf16.msra.mxu0 %v4233_v7  ;;  %v1118_v7 = vand.u32 4294901760, %v1058_v56 }
  0xf2   :  { %2439 = vmatprep.subr.bf16.mxu0 %v4234_v55  ;;  %v1121_v55 = vand.u32 4294901760, %v1059_v58 }
  0xf5   :  { %2441 = vmatpush1.bf16.msra.mxu0 %v4235_v38  ;;  %v3434_v38 = vpack.c.bf16 %v1169_v43, %v1166_v39 }
  0xf6   :  { %2443 = vmatprep.subr.bf16.mxu0 %v4236_v33  ;;  %v3436_v33 = vpack.c.bf16 %v1121_v55, %v1118_v7 }
  0xf7   :  { %4251 = vst [vmem:[#allocation18_spill] sm:$0xff] %v3434_v38 }
  0xf8   :  { %4252 = vst [vmem:[#allocation19_spill] sm:$0xff] %v3436_v33 }
  0xf9   :  { %2445 = vmatpush1.bf16.msra.mxu0 %v4237_v13  ;;  %v1076_v13 = vld [vmem:[#allocation7 + $0xe0] sm:$0xff] }
  0xfa   :  { %v1172_v28 = vand.u32 4294901760, %v1076_v13 }
  0xfc   :  { %999 = vmatmul.mubr.f32.vlgmr.msra.gmra.mrb[0].mxu0 %v2944_v54  ;;  %v1091_v54 = vand.u32 4294901760, %v3316_v32  ;;  %v3450_v49 = vpack.c.bf16 %v1175_v11, %v1172_v28 }
  0xfd   :  { %1004 = vmatprep.mubr.f32.mxu0 %v4186_v25  ;;  %v3324_v25 = vpack.c.bf16 %v1139_v50, %v1136_v63  ;;  %v1079_v63 = vld [vmem:[#allocation7 + $0xf8] sm:$0xff] }
  0xfe   :  { %4253 = vst [vmem:[#allocation20_spill] sm:$0xff] %v3450_v49  ;;  %v3460_v20 = vsub.f32 %v3316_v32, %v1091_v54  ;;  %v1181_v50 = vand.u32 4294901760, %v1079_v63 }
  0xff   :  { %4241 = vst [vmem:[#allocation26_spill] sm:$0xff] %v3324_v25  ;;  %2447 = vmatprep.subr.bf16.mxu1 %v3324_v25 }
 0x100   :  { %1006 = vmatmul.mubr.f32.gmra.mrb[2].mxu0 %v3105_v57  ;;  %v3330_v57 = vpack.c.bf16 %v1091_v54, %v1088_v61  ;;  %v1130_v61 = vand.u32 4294901760, %v1062_v14  ;;  %v4259_v54 = vand.u32 4294901760, %v3358_v8 }
 0x102   :  { %4242 = vst [vmem:[#allocation29_spill] sm:$0xff] %v3330_v57  ;;  %2449 = vmatpush3.bf16.msra.mxu1 %v3330_v57 }
 0x103   :  { %2451 = vmatprep.subr.bf16.mxu1 %v3350_v53 }
 0x106   :  { %2453 = vmatpush3.bf16.msra.mxu1 %v3356_v21 }
 0x107   :  { %2455 = vmatprep.subr.bf16.mxu1 %v3376_v45 }
 0x10a   :  { %2457 = vmatpush3.bf16.msra.mxu1 %v3382_v31 }
 0x10b   :  { %2459 = vmatprep.subr.bf16.mxu1 %v3402_v59 }
 0x10e   :  { %2461 = vmatpush3.bf16.msra.mxu1 %v3408_v60 }
 0x10f   :  { %2463 = vmatprep.subr.bf16.mxu1 %v3428_v24  ;;  %v3552_v24 = vsub.f32 %v1059_v58, %v1121_v55  ;;  %v4101_v55 = vand.u32 4294901760, %v3483_v40 }
 0x112   :  { %2465 = vmatpush3.bf16.msra.mxu1 %v3430_v29 }
 0x113   :  { %2467 = vmatprep.subr.bf16.mxu1 %v3434_v38  ;;  %v4256_v38 = vand.u32 4294901760, %v3334_v51 }
 0x115   :  { %v3478_v29 = vsub.f32 %v3334_v51, %v4256_v38  ;;  %v4261_v38 = vand.u32 4294901760, %v3365_v44 }
 0x116   :  { %2469 = vmatpush3.bf16.msra.mxu1 %v3436_v33  ;;  %v4255_v33 = vand.u32 4294901760, %v3332_v10 }
 0x117   :  { %2471 = vmatprep.subr.bf16.mxu1 %v3450_v49  ;;  %v3503_v16 = vsub.f32 %v3365_v44, %v4261_v38  ;;  %v4266_v38 = vand.u32 4294901760, %v3393_v47 }
 0x118   :  { %v3473_v49 = vsub.f32 %v3332_v10, %v4255_v33  ;;  %v3493_v10 = vsub.f32 %v3358_v8, %v4259_v54  ;;  %v4260_v33 = vand.u32 4294901760, %v3360_v22  ;;  %v4264_v54 = vand.u32 4294901760, %v3386_v36 }
 0x11a   :  { %2473 = vmatpush3.bf16.msra.mxu1 %v3462_v27  ;;  %v4258_v27 = vand.u32 4294901760, %v3341_v9  ;;  %v3498_v51 = vsub.f32 %v3360_v22, %v4260_v33  ;;  %v3518_v22 = vsub.f32 %v3386_v36, %v4264_v54  ;;  %v4265_v33 = vand.u32 4294901760, %v3391_v42 }
 0x11b   :  { %v3541_v54 = vsub.f32 %v3417_v17, %v1112_v19  ;;  %v3562_v17 = vpack.c.bf16 %v1181_v50, %v1178_v6  ;;  %v3566_v19 = vsub.f32 %v1079_v63, %v1181_v50 }
 0x11c   :  { %v3488_v32 = vsub.f32 %v3341_v9, %v4258_v27  ;;  %v3508_v9 = vsub.f32 %v3367_v1, %v4262_v15  ;;  %v4263_v27 = vand.u32 4294901760, %v3384_v35  ;;  %v3523_v44 = vsub.f32 %v3391_v42, %v4265_v33 }
 0x11d   :  { %v3528_v1 = vsub.f32 %v3393_v47, %v4266_v38  ;;  %v4267_v15 = vand.u32 4294901760, %v3410_v2  ;;  %v3544_v42 = vsub.f32 %v3419_v18, %v1115_v23  ;;  %v3546_v33 = vsub.f32 %v1074_v30, %v1166_v39  ;;  %4273 = vst [vmem:[#allocation28_spill] sm:$0xff] %v3562_v17  ;;  %4275 = vst [vmem:[#allocation32_spill] sm:$0xff] %v3566_v19 }
 0x11e   :  { %v3513_v8 = vsub.f32 %v3384_v35, %v4263_v27  ;;  %v4268_v27 = vand.u32 4294901760, %v3412_v3  ;;  %v3548_v47 = vsub.f32 %v1075_v34, %v1169_v43  ;;  %v3550_v38 = vsub.f32 %v1058_v56, %v1118_v7  ;;  %2475 = vmatprep.subr.bf16.mxu1 %v3562_v17 }
 0x11f   :  { %v3533_v35 = vsub.f32 %v3410_v2, %v4267_v15  ;;  %v3554_v2 = vsub.f32 %v1076_v13, %v1172_v28  ;;  %v3556_v15 = vsub.f32 %v1077_v0, %v1175_v11  ;;  %v3564_v18 = vsub.f32 %v1078_v46, %v1178_v6 }
 0x120   :  { %v3538_v36 = vsub.f32 %v3412_v3, %v4268_v27  ;;  %v3558_v3 = vsub.f32 %v1060_v12, %v1124_v52  ;;  %v3560_v27 = vsub.f32 %v1061_v4, %v1127_v48  ;;  %v3568_v23 = vpack.c.bf16 %v1133_v5, %v1130_v61 }
 0x121   :  { %4269 = vst [vmem:[#allocation22_spill] sm:$0xff] %v3554_v2  ;;  %4270 = vst [vmem:[#allocation23_spill] sm:$0xff] %v3556_v15  ;;  %v3570_v30 = vsub.f32 %v1062_v14, %v1130_v61  ;;  %v3572_v34 = vsub.f32 %v1063_v26, %v1133_v5  ;;  %v4279_v39 = vand.u32 4294901760, %v3443_v41  ;;  %v4280_v52 = vand.u32 4294901760, %v3448_v37 }
 0x122   :  { %4271 = vst [vmem:[#allocation24_spill] sm:$0xff] %v3558_v3  ;;  %4272 = vst [vmem:[#allocation25_spill] sm:$0xff] %v3560_v27  ;;  %v4281_v4 = vand.u32 4294901760, %v3455_v62  ;;  %v4282_v56 = vand.u32 4294901760, %v3460_v20  ;;  %v4107_v5 = vand.u32 4294901760, %v3473_v49  ;;  %v4102_v26 = vand.u32 4294901760, %v3478_v29  ;;  %2477 = vmatpush3.bf16.msra.mxu1 %v3568_v23 }
 0x123   :  { %4274 = vst [vmem:[#allocation31_spill] sm:$0xff] %v3564_v18  ;;  %4276 = vst [vmem:[#allocation33_spill] sm:$0xff] %v3568_v23  ;;  %v1330_v43 = vsub.f32 %v3443_v41, %v4279_v39  ;;  %v1337_v48 = vsub.f32 %v3448_v37, %v4280_v52  ;;  %v4097_v13 = vand.u32 4294901760, %v3488_v32  ;;  %v1232_v6 = vsub.f32 %v3483_v40, %v4101_v55 }
 0x124   :  { %4277 = vst [vmem:[#allocation34_spill] sm:$0xff] %v3570_v30  ;;  %4278 = vst [vmem:[#allocation35_spill] sm:$0xff] %v3572_v34  ;;  %v1218_v12 = vsub.f32 %v3455_v62, %v4281_v4  ;;  %v1225_v14 = vsub.f32 %v3460_v20, %v4282_v56  ;;  %v1344_v11 = vsub.f32 %v3473_v49, %v4107_v5  ;;  %v4096_v61 = vand.u32 4294901760, %v3493_v10 }
 0x125   :  { %v1331_v58 = vand.u32 4294901760, %v1330_v43  ;;  %v1338_v7 = vand.u32 4294901760, %v1337_v48  ;;  %v1351_v46 = vsub.f32 %v3478_v29, %v4102_v26  ;;  %v1239_v50 = vsub.f32 %v3488_v32, %v4097_v13 }
 0x126   :  { %v1219_v0 = vand.u32 4294901760, %v1218_v12  ;;  %v1226_v28 = vand.u32 4294901760, %v1225_v14  ;;  %v1345_v43 = vand.u32 4294901760, %v1344_v11  ;;  %v4094_v48 = vand.u32 4294901760, %v3498_v51 }
 0x127   :  { %v2478_v63 = vpack.c.bf16 %v1338_v7, %v1331_v58  ;;  %v1352_v52 = vand.u32 4294901760, %v1351_v46  ;;  %v1233_v4 = vand.u32 4294901760, %v1232_v6  ;;  %v1240_v12 = vand.u32 4294901760, %v1239_v50 }
 0x128   :  { %v3605_v39 = vpack.c.bf16 %v1226_v28, %v1219_v0  ;;  %v1358_v56 = vsub.f32 %v3493_v10, %v4096_v61  ;;  %v4095_v14 = vand.u32 4294901760, %v3503_v16  ;;  %v1365_v7 = vsub.f32 %v3498_v51, %v4094_v48 }
 0x129   :  { %2479 = vmatprep.subr.bf16.mxu1 %v2478_v63  ;;  %v3612_v58 = vpack.c.bf16 %v1352_v52, %v1345_v43  ;;  %v4098_v0 = vand.u32 4294901760, %v3508_v9  ;;  %v4099_v28 = vand.u32 4294901760, %v3513_v8  ;;  %v3619_v11 = vpack.c.bf16 %v1240_v12, %v1233_v4 }
 0x12a   :  { %v1359_v46 = vand.u32 4294901760, %v1358_v56  ;;  %v1246_v63 = vsub.f32 %v3503_v16, %v4095_v14  ;;  %v4100_v6 = vand.u32 4294901760, %v3518_v22  ;;  %v1366_v50 = vand.u32 4294901760, %v1365_v7 }
 0x12b   :  { %v1253_v43 = vsub.f32 %v3508_v9, %v4098_v0  ;;  %v1372_v52 = vsub.f32 %v3513_v8, %v4099_v28  ;;  %v4103_v48 = vand.u32 4294901760, %v3523_v44  ;;  %v4104_v56 = vand.u32 4294901760, %v3528_v1 }
 0x12c   :  { %v1247_v4 = vand.u32 4294901760, %v1246_v63  ;;  %v1379_v12 = vsub.f32 %v3518_v22, %v4100_v6  ;;  %v4105_v14 = vand.u32 4294901760, %v3533_v35  ;;  %v3637_v7 = vpack.c.bf16 %v1366_v50, %v1359_v46 }
 0x12d   :  { %v1254_v61 = vand.u32 4294901760, %v1253_v43  ;;  %v1373_v13 = vand.u32 4294901760, %v1372_v52  ;;  %v1260_v0 = vsub.f32 %v3523_v44, %v4103_v48  ;;  %v1267_v63 = vsub.f32 %v3528_v1, %v4104_v56 }
 0x12e   :  { %v1380_v28 = vand.u32 4294901760, %v1379_v12  ;;  %v1386_v6 = vsub.f32 %v3533_v35, %v4105_v14  ;;  %v4106_v55 = vand.u32 4294901760, %v3538_v36  ;;  %v4108_v50 = vand.u32 4294901760, %v3541_v54 }
 0x12f   :  { %v3649_v26 = vpack.c.bf16 %v1254_v61, %v1247_v4  ;;  %v1261_v46 = vand.u32 4294901760, %v1260_v0  ;;  %v4109_v43 = vand.u32 4294901760, %v3544_v42  ;;  %v1268_v12 = vand.u32 4294901760, %v1267_v63 }
 0x130   :  { %v3653_v52 = vpack.c.bf16 %v1380_v28, %v1373_v13  ;;  %v1387_v48 = vand.u32 4294901760, %v1386_v6  ;;  %v1393_v56 = vsub.f32 %v3538_v36, %v4106_v55  ;;  %v1274_v14 = vsub.f32 %v3541_v54, %v4108_v50 }
 0x131   :  { %v1281_v61 = vsub.f32 %v3544_v42, %v4109_v43  ;;  %v4112_v0 = vand.u32 4294901760, %v3546_v33  ;;  %v4117_v4 = vand.u32 4294901760, %v3548_v47  ;;  %v3666_v13 = vpack.c.bf16 %v1268_v12, %v1261_v46 }
 0x132   :  { %v1394_v28 = vand.u32 4294901760, %v1393_v56  ;;  %v4118_v6 = vand.u32 4294901760, %v3550_v38  ;;  %v4119_v63 = vand.u32 4294901760, %v3552_v24  ;;  %v1275_v55 = vand.u32 4294901760, %v1274_v14 }
 0x133   :  { %v1282_v5 = vand.u32 4294901760, %v1281_v61  ;;  %v1400_v50 = vsub.f32 %v3546_v33, %v4112_v0  ;;  %v1407_v43 = vsub.f32 %v3548_v47, %v4117_v4  ;;  %v4120_v14 = vand.u32 4294901760, %v3554_v2 }
 0x134   :  { %v3676_v23 = vpack.c.bf16 %v1394_v28, %v1387_v48  ;;  %v1288_v56 = vsub.f32 %v3550_v38, %v4118_v6  ;;  %v1295_v46 = vsub.f32 %v3552_v24, %v4119_v63  ;;  %v4121_v17 = vand.u32 4294901760, %v3556_v15 }
 0x135   :  { %v3685_v12 = vpack.c.bf16 %v1282_v5, %v1275_v55  ;;  %v1401_v61 = vand.u32 4294901760, %v1400_v50  ;;  %v1408_v0 = vand.u32 4294901760, %v1407_v43  ;;  %v1414_v48 = vsub.f32 %v3554_v2, %v4120_v14 }
 0x136   :  { %v1289_v60 = vand.u32 4294901760, %v1288_v56  ;;  %v1296_v4 = vand.u32 4294901760, %v1295_v46  ;;  %v4122_v28 = vand.u32 4294901760, %v3558_v3  ;;  %v1421_v63 = vsub.f32 %v3556_v15, %v4121_v17 }
 0x137   :  { %v3692_v6 = vpack.c.bf16 %v1408_v0, %v1401_v61  ;;  %v4125_v5 = vand.u32 4294901760, %v3560_v27  ;;  %v4128_v55 = vand.u32 4294901760, %v3564_v18  ;;  %v1415_v43 = vand.u32 4294901760, %v1414_v48 }
 0x138   :  { %v3699_v50 = vpack.c.bf16 %v1296_v4, %v1289_v60  ;;  %v1302_v56 = vsub.f32 %v3558_v3, %v4122_v28  ;;  %v4133_v46 = vand.u32 4294901760, %v3566_v19  ;;  %v1422_v14 = vand.u32 4294901760, %v1421_v63 }
 0x139   :  { %v1309_v0 = vsub.f32 %v3560_v27, %v4125_v5  ;;  %v1428_v61 = vsub.f32 %v3564_v18, %v4128_v55  ;;  %v4137_v17 = vand.u32 4294901760, %v3570_v30  ;;  %v4136_v48 = vand.u32 4294901760, %v3572_v34 }
 0x13a   :  { %v1303_v60 = vand.u32 4294901760, %v1302_v56  ;;  %v1435_v4 = vsub.f32 %v3566_v19, %v4133_v46  ;;  %v3716_v28 = vpack.c.bf16 %v1422_v14, %v1415_v43 }
 0x13b   :  { %v1310_v63 = vand.u32 4294901760, %v1309_v0  ;;  %v1429_v59 = vand.u32 4294901760, %v1428_v61  ;;  %v1316_v5 = vsub.f32 %v3570_v30, %v4137_v17  ;;  %v1323_v55 = vsub.f32 %v3572_v34, %v4136_v48 }
 0x13c   :  { %v1436_v31 = vand.u32 4294901760, %v1435_v4 }
 0x13d   :  { %v3724_v56 = vpack.c.bf16 %v1310_v63, %v1303_v60  ;;  %v1317_v45 = vand.u32 4294901760, %v1316_v5  ;;  %v1324_v46 = vand.u32 4294901760, %v1323_v55  ;;  %v96_v60 = vld [vmem:[%s4000_s2] sm:$0x3] }
 0x13e   :  { %v3726_v21 = vpack.c.bf16 %v1436_v31, %v1429_v59  ;;  %v98_v59 = vlaneseq }
 0x13f   :  { %v3728_v53 = vpack.c.bf16 %v1324_v46, %v1317_v45 }
 0x140   :  { %v99_v46 = vshrl.u32 %v98_v59, 7 }
 0x142   :  { %v100_v45 = vsub.s32 0, %v99_v46  ;;  %v104_v4 = vsub.s32 1, %v99_v46 }
 0x144   :  { %v101_v31 = vrot.slane %v96_v60, %v100_v45  ;;  %v105_v5 = vrot.slane %v96_v60, %v104_v4 }
 0x1cf   :  { %v1000_v63 = vpop.f32.mrb[0].mxu0 }
 0x1d0   :  { %v2638_v61 = vadd.f32 %v1000_v63, %v101_v31  ;;  %v1002_v0 = vpop.f32.mrb[1].mxu0 }
 0x1d1   :  { %v2639_v48 = vadd.f32 %v1002_v0, %v105_v5 }
 0x1d2   :  { %v1012_v43 = vmul.f32 %v2638_v61, %v2638_v61 }
 0x1d3   :  { %v1013_v14 = vmul.f32 %v2639_v48, %v2639_v48  ;;  %v1007_v17 = vpop.f32.mrb[2].mxu0 }
 0x1d4   :  { %v1016_v57 = vmul.f32 %v2638_v61, %v1012_v43  ;;  %v2640_v25 = vadd.f32 %v1007_v17, %v101_v31  ;;  %v1009_v55 = vpop.f32.mrb[3].mxu0 }
 0x1d5   :  { %v1017_v30 = vmul.f32 %v2639_v48, %v1013_v14  ;;  %v2641_v59 = vadd.f32 %v1009_v55, %v105_v5 }
 0x1d6   :  { %v1020_v34 = vmul.f32 0.044715, %v1016_v57  ;;  %v1014_v18 = vmul.f32 %v2640_v25, %v2640_v25 }
 0x1d7   :  { %v1021_v19 = vmul.f32 0.044715, %v1017_v30  ;;  %v1015_v3 = vmul.f32 %v2641_v59, %v2641_v59 }
 0x1d8   :  { %v1024_v27 = vadd.f32 %v2638_v61, %v1020_v34  ;;  %v1018_v46 = vmul.f32 %v2640_v25, %v1014_v18 }
 0x1d9   :  { %v1025_v45 = vadd.f32 %v2639_v48, %v1021_v19  ;;  %v1019_v60 = vmul.f32 %v2641_v59, %v1015_v3 }
 0x1da   :  { %v1028_v4 = vmul.f32 0.7978846, %v1024_v27  ;;  %v1022_v63 = vmul.f32 0.044715, %v1018_v46 }
 0x1db   :  { %v1029_v2 = vmul.f32 0.7978846, %v1025_v45  ;;  %v1023_v0 = vmul.f32 0.044715, %v1019_v60 }
 0x1dc   :  { %2671 = vtanh.f32 %v1028_v4  ;;  %v1026_v15 = vadd.f32 %v2640_v25, %v1022_v63 }
 0x1dd   :  { %2673 = vtanh.f32 %v1029_v2  ;;  %v1027_v43 = vadd.f32 %v2641_v59, %v1023_v0 }
 0x1de   :  { %v1030_v17 = vmul.f32 0.7978846, %v1026_v15 }
 0x1df   :  { %v1031_v31 = vmul.f32 0.7978846, %v1027_v43 }
 0x1e0   :  { %2675 = vtanh.f32 %v1030_v17 }
 0x1e1   :  { %2677 = vtanh.f32 %v1031_v31 }
 0x1e6   :  { %v2672_v57 = vpop.eup %2671 }
 0x1e7   :  { %v2674_v14 = vpop.eup %2673  ;;  %v1036_v30 = vadd.f32 1.0, %v2672_v57 }
 0x1e8   :  { %v1037_v5 = vadd.f32 1.0, %v2674_v14 }
 0x1e9   :  { %v1040_v34 = vmul.f32 0.5, %v1036_v30 }
 0x1ea   :  { %v2676_v18 = vpop.eup %2675  ;;  %v1041_v19 = vmul.f32 0.5, %v1037_v5 }
 0x1eb   :  { %v2678_v3 = vpop.eup %2677  ;;  %v1044_v27 = vmul.f32 %v2638_v61, %v1040_v34  ;;  %v1038_v55 = vadd.f32 1.0, %v2676_v18 }
 0x1ec   :  { %v1039_v46 = vadd.f32 1.0, %v2678_v3  ;;  %v1045_v45 = vmul.f32 %v2639_v48, %v1041_v19 }
 0x1ed   :  { %v3765_v60 = vand.u32 4294901760, %v1044_v27  ;;  %v1042_v2 = vmul.f32 0.5, %v1038_v55 }
 0x1ee   :  { %v1043_v4 = vmul.f32 0.5, %v1039_v46  ;;  %v3767_v15 = vand.u32 4294901760, %v1045_v45 }
 0x1ef   :  { %v1046_v63 = vmul.f32 %v2640_v25, %v1042_v2  ;;  %v3770_v0 = vsub.f32 %v1044_v27, %v3765_v60  ;;  %v4299_v2 = vld [vmem:[#allocation24_spill] sm:$0xff] }
 0x1f0   :  { %v1047_v43 = vmul.f32 %v2641_v59, %v1043_v4  ;;  %v3773_v17 = vsub.f32 %v1045_v45, %v3767_v15  ;;  %v4298_v45 = vld [vmem:[#allocation25_spill] sm:$0xff] }
 0x1f1   :  { %v3775_v31 = vand.u32 4294901760, %v1046_v63  ;;  %v4160_v61 = vand.u32 4294901760, %v3770_v0  ;;  %v4300_v4 = vpack.c.bf16 %v4298_v45, %v4299_v2 }
 0x1f2   :  { %v3778_v57 = vand.u32 4294901760, %v1047_v43  ;;  %v1185_v48 = vand.u32 4294901760, %v3773_v17 }
 0x1f3   :  { %v1192_v14 = vsub.f32 %v3770_v0, %v4160_v61  ;;  %v3785_v25 = vsub.f32 %v1046_v63, %v3775_v31  ;;  %v4301_v63 = vld [vmem:[#allocation32_spill] sm:$0xff] }
 0x1f4   :  { %v1186_v59 = vsub.f32 %v3773_v17, %v1185_v48  ;;  %v3789_v30 = vsub.f32 %v1047_v43, %v3778_v57  ;;  %v4302_v43 = vld [vmem:[#allocation31_spill] sm:$0xff] }
 0x1f5   :  { %v4158_v5 = vand.u32 4294901760, %v3785_v25  ;;  %v1193_v19 = vand.u32 4294901760, %v1192_v14  ;;  %v4304_v14 = vld [vmem:[#allocation35_spill] sm:$0xff] }
 0x1f6   :  { %v1187_v34 = vand.u32 4294901760, %v1186_v59  ;;  %v4159_v18 = vand.u32 4294901760, %v3789_v30  ;;  %v4305_v59 = vld [vmem:[#allocation34_spill] sm:$0xff] }
 0x1f7   :  { %v1207_v3 = vsub.f32 %v3785_v25, %v4158_v5  ;;  %v4327_v5 = vand.u32 4294901760, %v3473_v49 }
 0x1f8   :  { %1188 = vmatprep.mubr.f32.mxu1 %v1187_v34  ;;  %v1201_v27 = vsub.f32 %v3789_v30, %v4159_v18  ;;  %v4306_v34 = vpack.c.bf16 %v4304_v14, %v4305_v59  ;;  %v4328_v18 = vand.u32 4294901760, %v3478_v29 }
 0x1f9   :  { %1194 = vmatmul.mubr.f32.vlgmr.msra.gmra.mrb[0].mxu1 %v1193_v19  ;;  %v1208_v46 = vand.u32 4294901760, %v1207_v3  ;;  %v4307_v19 = vld [vmem:[#allocation26_spill] sm:$0xff]  ;;  %v4308_v3 = vld [vmem:[#allocation29_spill] sm:$0xff] }
 0x1fa   :  { %2481 = vmatpush3.bf16.msra.mxu1 %v3605_v39  ;;  %v1202_v55 = vand.u32 4294901760, %v1201_v27  ;;  %v4285_v39 = vpack.c.bf16 %v3478_v29, %v3473_v49  ;;  %v4309_v27 = vld [vmem:[#allocation30_spill] sm:$0xff]  ;;  %v2578_v61 = vpack.c.bf16 %v4328_v18, %v4327_v5  ;;  %v4334_v49 = vand.u32 4294901760, %v3498_v51 }
 0x1fb   :  { %2483 = vmatprep.subr.bf16.mxu1 %v3612_v58  ;;  %v4288_v58 = vpack.c.bf16 %v3508_v9, %v3503_v16  ;;  %v4335_v29 = vand.u32 4294901760, %v3785_v25  ;;  %v4342_v18 = vand.u32 4294901760, %v3533_v35 }
 0x1fc   :  { %1203 = vmatprep.mubr.f32.mxu1 %v1202_v55  ;;  %v4310_v55 = vld [vmem:[#allocation12_spill] sm:$0xff] }
 0x1fd   :  { %1209 = vmatmul.mubr.f32.gmra.mrb[2].mxu1 %v1208_v46  ;;  %v4311_v46 = vld [vmem:[#allocation27_spill] sm:$0xff] }
 0x1fe   :  { %2485 = vmatpush3.bf16.msra.mxu1 %v3619_v11  ;;  %1439 = vmatprep.mubr.f32.mxu1 %v3767_v15  ;;  %v4289_v11 = vpack.c.bf16 %v3518_v22, %v3513_v8 }
 0x1ff   :  { %2487 = vmatprep.subr.bf16.mxu1 %v3637_v7  ;;  %v4290_v7 = vpack.c.bf16 %v3528_v1, %v3523_v44 }
 0x202   :  { %2489 = vmatpush3.bf16.msra.mxu1 %v3649_v26  ;;  %v4283_v26 = vpack.c.bf16 %v3448_v37, %v3443_v41 }
 0x203   :  { %2491 = vmatprep.subr.bf16.mxu1 %v3653_v52  ;;  %v4291_v52 = vpack.c.bf16 %v3538_v36, %v3533_v35  ;;  %v4349_v35 = vand.u32 4294901760, %v3552_v24 }
 0x206   :  { %2493 = vmatpush3.bf16.msra.mxu1 %v3666_v13  ;;  %v4292_v13 = vpack.c.bf16 %v3544_v42, %v3541_v54 }
 0x207   :  { %2495 = vmatprep.subr.bf16.mxu1 %v3676_v23  ;;  %v4284_v23 = vpack.c.bf16 %v3460_v20, %v3455_v62 }
 0x20a   :  { %2497 = vmatpush3.bf16.msra.mxu1 %v3685_v12  ;;  %v4294_v12 = vpack.c.bf16 %v3552_v24, %v3550_v38  ;;  %v4356_v24 = vand.u32 4294901760, %v4305_v59  ;;  %v2025_v59 = vld [vmem:[%s4002_s4] ss:$0 sm:$0xff]  ;;  %s2781_s4 = smov [#allocation8]  }
 0x20b   :  { %2499 = vmatprep.subr.bf16.mxu1 %v3692_v6  ;;  %v4293_v6 = vpack.c.bf16 %v3548_v47, %v3546_v33  ;;  %s2012_s8 = sshll.u32 %s2781_s4, 4  ;;  %s2013_s8 = int_to_ptr.vmem [resolvable:$true] %s2012_s8 }
 0x20c   :  { %s2745_s9 = scalar_lea.vmem %s2013_s8, 256  ;;  %p2750_p11 = scmp.lt.s32.totalorder %s2013_s8, %s2013_s8 }
 0x20d   :  { %p2746_p10 = scmp.ne.s32.totalorder %s2013_s8, %s2745_s9  ;;  %p2751_p12 = scmp.lt.s32.totalorder %s2745_s9, %s2745_s9 }
 0x20e   :  { %2501 = vmatpush3.bf16.msra.mxu1 %v3699_v50  ;;  %v4296_v50 = vld [vmem:[#allocation22_spill] sm:$0xff] }
 0x20f   :  { %2503 = vmatprep.subr.bf16.mxu1 %v3716_v28  ;;  %v4295_v28 = vld [vmem:[#allocation23_spill] sm:$0xff]  ;;  %p2752_p13 = por %p2751_p12, %p2750_p11 }
 0x211   :  { %p2753_p0 = pnand %p2752_p13, %p2746_p10 }
 0x212   :  { %2505 = vmatpush3.bf16.msra.mxu1 %v3724_v56  ;;  %v4297_v56 = vpack.c.bf16 %v4295_v28, %v4296_v50 }
 0x213   :  { %2507 = vmatprep.subr.bf16.mxu1 %v3726_v21  ;;  %v4287_v21 = vpack.c.bf16 %v3498_v51, %v3493_v10  ;;  %v4340_v51 = vand.u32 4294901760, %v3523_v44  ;;  %v4347_v44 = vand.u32 4294901760, %v3548_v47  ;;  %v4354_v47 = vand.u32 4294901760, %v4302_v43 }
 0x216   :  { %2509 = vmatpush3.bf16.msra.mxu1 %v3728_v53  ;;  %v4286_v53 = vpack.c.bf16 %v3488_v32, %v3483_v40 }
 0x217   :  { %2511 = vmatprep.subr.bf16.mxu1 %v4283_v26  ;;  %v4312_v26 = vld [vmem:[#allocation13_spill] sm:$0xff] }
 0x219   :  { %1441 = vmatmul.mubr.f32.vlgmr.msra.gmra.mrb[4].mxu1 %v3765_v60 }
 0x21a   :  { %1446 = vmatprep.mubr.f32.mxu1 %v3778_v57  ;;  %2513 = vmatpush3.bf16.msra.mxu1 %v4284_v23  ;;  %v4313_v23 = vld [vmem:[#allocation14_spill] sm:$0xff] }
 0x21b   :  { %2515 = vmatprep.subr.bf16.mxu1 %v4285_v39  ;;  %v4314_v39 = vld [vmem:[#allocation15_spill] sm:$0xff] }
 0x21d   :  { %1448 = vmatmul.mubr.f32.gmra.mrb[6].mxu1 %v3775_v31 }
 0x21e   :  { %2517 = vmatpush3.bf16.msra.mxu1 %v4286_v53  ;;  %1583 = vmatprep.mubr.f32.mxu1 %v3773_v17  ;;  %v4303_v17 = vpack.c.bf16 %v4301_v63, %v4302_v43  ;;  %v4315_v53 = vld [vmem:[#allocation16_spill] sm:$0xff] }
 0x21f   :  { %2519 = vmatprep.subr.bf16.mxu1 %v4287_v21  ;;  %v4316_v21 = vld [vmem:[#allocation17_spill] sm:$0xff] }
 0x222   :  { %2521 = vmatpush3.bf16.msra.mxu1 %v4288_v58  ;;  %v4317_v58 = vld [vmem:[#allocation18_spill] sm:$0xff] }
 0x223   :  { %2523 = vmatprep.subr.bf16.mxu1 %v4289_v11  ;;  %v4318_v11 = vld [vmem:[#allocation19_spill] sm:$0xff] }
 0x226   :  { %2525 = vmatpush3.bf16.msra.mxu1 %v4290_v7  ;;  %v4319_v7 = vld [vmem:[#allocation20_spill] sm:$0xff] }
 0x227   :  { %2527 = vmatprep.subr.bf16.mxu1 %v4291_v52  ;;  %v4320_v52 = vld [vmem:[#allocation21_spill] sm:$0xff] }
 0x22a   :  { %2529 = vmatpush3.bf16.msra.mxu1 %v4292_v13  ;;  %v4322_v13 = vand.u32 4294901760, %v3443_v41  ;;  %v4330_v41 = vand.u32 4294901760, %v3789_v30 }
 0x22b   :  { %2531 = vmatprep.subr.bf16.mxu1 %v4293_v6  ;;  %v4323_v6 = vand.u32 4294901760, %v3448_v37  ;;  %v4331_v37 = vand.u32 4294901760, %v3483_v40 }
 0x22e   :  { %2533 = vmatpush3.bf16.msra.mxu1 %v4294_v12  ;;  %v2574_v12 = vpack.c.bf16 %v4323_v6, %v4322_v13 }
 0x22f   :  { %2535 = vmatprep.subr.bf16.mxu1 %v4297_v56  ;;  %v4324_v56 = vld [vmem:[#allocation33_spill] sm:$0xff] }
 0x232   :  { %2537 = vmatpush3.bf16.msra.mxu1 %v4300_v4  ;;  %v4325_v4 = vand.u32 4294901760, %v3455_v62  ;;  %v4332_v62 = vand.u32 4294901760, %v3488_v32  ;;  %v4338_v32 = vand.u32 4294901760, %v3513_v8  ;;  %v4345_v8 = vand.u32 4294901760, %v3544_v42 }
 0x233   :  { %2539 = vmatprep.subr.bf16.mxu1 %v4303_v17  ;;  %v4326_v17 = vand.u32 4294901760, %v3460_v20  ;;  %v4333_v20 = vand.u32 4294901760, %v3493_v10  ;;  %v4352_v42 = vand.u32 4294901760, %v4299_v2 }
 0x234   :  { %v2580_v13 = vpack.c.bf16 %v4332_v62, %v4331_v37 }
 0x235   :  { %v2582_v6 = vpack.c.bf16 %v4334_v49, %v4333_v20 }
 0x236   :  { %2541 = vmatpush3.bf16.msra.mxu1 %v4306_v34  ;;  %v2576_v34 = vpack.c.bf16 %v4326_v17, %v4325_v4 }
 0x237   :  { %2543 = vmatprep.subr.bf16.mxu1 %v4307_v19 }
 0x239   :  { %1586 = vmatmul.mubr.f32.vlgmr.msra.gmra.mrb[8].mxu1 %v3770_v0 }
 0x23a   :  { %1592 = vmatprep.mubr.f32.mxu1 %v3789_v30  ;;  %2545 = vmatpush3.bf16.msra.mxu1 %v4308_v3  ;;  %v4337_v30 = vand.u32 4294901760, %v3508_v9  ;;  %v4344_v9 = vand.u32 4294901760, %v3541_v54  ;;  %v4351_v54 = vand.u32 4294901760, %v4295_v28 }
 0x23b   :  { %2547 = vmatprep.subr.bf16.mxu1 %v4309_v27 }
 0x23d   :  { %1595 = vmatmul.mubr.f32.gmra.mrb[10].mxu1 %v3785_v25  ;;  %v4341_v25 = vand.u32 4294901760, %v3528_v1  ;;  %v4348_v1 = vand.u32 4294901760, %v3550_v38  ;;  %v4355_v38 = vand.u32 4294901760, %v4301_v63 }
 0x23e   :  { %2549 = vmatpush3.bf16.msra.mxu1 %v4310_v55  ;;  %1699 = vmatprep.mubr.f32.mxu1 %v1185_v48  ;;  %v4321_v48 = vld [vmem:[#allocation28_spill] sm:$0xff] }
 0x23f   :  { %2551 = vmatprep.subr.bf16.mxu1 %v4311_v46  ;;  %v2588_v5 = vpack.c.bf16 %v4341_v25, %v4340_v51  ;;  %v2596_v17 = vpack.c.bf16 %v4349_v35, %v4348_v1  ;;  %v2602_v37 = vpack.c.bf16 %v4355_v38, %v4354_v47 }
 0x242   :  { %2553 = vmatpush3.bf16.msra.mxu1 %v4312_v26 }
 0x243   :  { %2555 = vmatprep.subr.bf16.mxu1 %v4313_v23 }
 0x246   :  { %2557 = vmatpush3.bf16.msra.mxu1 %v4314_v39 }
 0x247   :  { %2559 = vmatprep.subr.bf16.mxu1 %v4315_v53 }
 0x24a   :  { %2561 = vmatpush3.bf16.msra.mxu1 %v4316_v21 }
 0x24b   :  { %2563 = vmatprep.subr.bf16.mxu1 %v4317_v58 }
 0x24e   :  { %2565 = vmatpush3.bf16.msra.mxu1 %v4318_v11 }
 0x24f   :  { %2567 = vmatprep.subr.bf16.mxu1 %v4319_v7 }
 0x252   :  { %2569 = vmatpush3.bf16.msra.mxu1 %v4320_v52 }
 0x253   :  { %2571 = vmatprep.subr.bf16.mxu1 %v4321_v48  ;;  %v4329_v48 = vand.u32 4294901760, %v3770_v0  ;;  %v4336_v0 = vand.u32 4294901760, %v3503_v16  ;;  %v4343_v16 = vand.u32 4294901760, %v3538_v36  ;;  %v4350_v36 = vand.u32 4294901760, %v4296_v50 }
 0x254   :  { %v4357_v50 = vand.u32 4294901760, %v4304_v14 }
 0x255   :  { %v2584_v40 = vpack.c.bf16 %v4337_v30, %v4336_v0 }
 0x256   :  { %2573 = vmatpush3.bf16.msra.mxu1 %v4324_v56  ;;  %v2604_v62 = vpack.c.bf16 %v4357_v50, %v4356_v24 }
 0x257   :  { %2575 = vmatprep.subr.bf16.mxu1 %v2574_v12  ;;  %v2592_v12 = vpack.c.bf16 %v4345_v8, %v4344_v9 }
 0x259   :  { %1703 = vmatmul.mubr.f32.vlgmr.msra.gmra.mrb[12].mxu1 %v4329_v48  ;;  %v2590_v48 = vpack.c.bf16 %v4343_v16, %v4342_v18 }
 0x25a   :  { %1710 = vmatprep.mubr.f32.mxu1 %v4330_v41  ;;  %2577 = vmatpush3.bf16.msra.mxu1 %v2576_v34  ;;  %v2598_v34 = vpack.c.bf16 %v4351_v54, %v4350_v36 }
 0x25b   :  { %2579 = vmatprep.subr.bf16.mxu1 %v2578_v61  ;;  %v4339_v61 = vand.u32 4294901760, %v3518_v22  ;;  %v4346_v22 = vand.u32 4294901760, %v3546_v33  ;;  %v4353_v33 = vand.u32 4294901760, %v4298_v45 }
 0x25d   :  { %1714 = vmatmul.mubr.f32.gmra.mrb[14].mxu1 %v4335_v29  ;;  %v2586_v10 = vpack.c.bf16 %v4339_v61, %v4338_v32  ;;  %v2594_v4 = vpack.c.bf16 %v4347_v44, %v4346_v22  ;;  %v2600_v41 = vpack.c.bf16 %v4353_v33, %v4352_v42 }
 0x25e   :  { %2581 = vmatpush3.bf16.msra.mxu1 %v2580_v13  ;;  %1880 = vmatprep.mubr.f32.mxu1 %v3767_v15 }
 0x25f   :  { %2583 = vmatprep.subr.bf16.mxu1 %v2582_v6 }
 0x262   :  { %2585 = vmatpush3.bf16.msra.mxu1 %v2584_v40 }
 0x263   :  { %2587 = vmatprep.subr.bf16.mxu1 %v2586_v10 }
 0x266   :  { %2589 = vmatpush3.bf16.msra.mxu1 %v2588_v5 }
 0x267   :  { %2591 = vmatprep.subr.bf16.mxu1 %v2590_v48 }
 0x26a   :  { %2593 = vmatpush3.bf16.msra.mxu1 %v2592_v12 }
 0x26b   :  { %2595 = vmatprep.subr.bf16.mxu1 %v2594_v4 }
 0x26e   :  { %2597 = vmatpush3.bf16.msra.mxu1 %v2596_v17 }
 0x26f   :  { %2599 = vmatprep.subr.bf16.mxu1 %v2598_v34 }
 0x272   :  { %2601 = vmatpush3.bf16.msra.mxu1 %v2600_v41 }
 0x273   :  { %2603 = vmatprep.subr.bf16.mxu1 %v2602_v37 }
 0x276   :  { %2605 = vmatpush3.bf16.msra.mxu1 %v2604_v62 }
 0x277   :  { %2607 = vmatprep.subr.bf16.mxu1 %v4307_v19 }
 0x279   :  { %1882 = vmatmul.mubr.f32.vlgmr.msra.gmra.mrb[16].mxu1 %v3765_v60 }
 0x27a   :  { %1887 = vmatprep.mubr.f32.mxu1 %v3778_v57  ;;  %2609 = vmatpush3.bf16.msra.mxu1 %v4308_v3 }
 0x27b   :  { %2611 = vmatprep.subr.bf16.mxu1 %v4309_v27 }
 0x27d   :  { %1889 = vmatmul.mubr.f32.gmra.mrb[18].mxu1 %v3775_v31 }
 0x27e   :  { %2613 = vmatpush3.bf16.msra.mxu1 %v4310_v55  ;;  %1991 = vmatprep.mubr.f32.mxu1 %v3767_v15  ;;  %v4358_v15 = vld [vmem:[#allocation28_spill] sm:$0xff] }
 0x27f   :  { %2615 = vmatprep.subr.bf16.mxu1 %v4311_v46 }
 0x282   :  { %2617 = vmatpush3.bf16.msra.mxu1 %v4312_v26 }
 0x283   :  { %2619 = vmatprep.subr.bf16.mxu1 %v4313_v23 }
 0x286   :  { %2621 = vmatpush3.bf16.msra.mxu1 %v4314_v39 }
 0x287   :  { %2623 = vmatprep.subr.bf16.mxu1 %v4315_v53 }
 0x28a   :  { %2625 = vmatpush3.bf16.msra.mxu1 %v4316_v21 }
 0x28b   :  { %2627 = vmatprep.subr.bf16.mxu1 %v4317_v58 }
 0x28e   :  { %2629 = vmatpush3.bf16.msra.mxu1 %v4318_v11 }
 0x28f   :  { %2631 = vmatprep.subr.bf16.mxu1 %v4319_v7 }
 0x292   :  { %2633 = vmatpush3.bf16.msra.mxu1 %v4320_v52 }
 0x293   :  { %2635 = vmatprep.subr.bf16.mxu1 %v4358_v15 }
 0x296   :  { %2637 = vmatpush3.bf16.msra.mxu1 %v4324_v56 }
 0x299   :  { %1993 = vmatmul.mubr.f32.vlgmr.msra.gmra.mrb[20].mxu1 %v3765_v60 }
 0x29a   :  { %1998 = vmatprep.mubr.f32.mxu1 %v3778_v57 }
 0x29d   :  { %2000 = vmatmul.mubr.f32.gmra.mrb[22].mxu1 %v3775_v31 }
 0x2cc   :  { %v2058_v28 = vpop.f32.mrb[0].mxu1 }
 0x2cd   :  { %v2059_v45 = vpop.f32.mrb[1].mxu1 }
 0x2ce   :  { %v2060_v2 = vadd.f32 %v2059_v45, %v2058_v28 }
 0x2d0   :  { %v2061_v63 = vpop.f32.mrb[2].mxu1  ;;  %v1196_v27 = vadd.f32 %v2060_v2, %v2025_v59 }
 0x2d1   :  { %v2062_v43 = vpop.f32.mrb[3].mxu1 }
 0x2d2   :  { %v2063_v14 = vadd.f32 %v2062_v43, %v2061_v63 }
 0x2d4   :  { %v1211_v57 = vadd.f32 %v2063_v14, %v2025_v59 }
 0x2ec   :  { %v2096_v19 = vpop.f32.mrb[4].mxu1 }
 0x2ed   :  { %v2097_v3 = vpop.f32.mrb[5].mxu1 }
 0x2ee   :  { %v2098_v55 = vadd.f32 %v2097_v3, %v2096_v19 }
 0x2f0   :  { %v1443_v46 = vadd.f32 %v2098_v55, %v1196_v27  ;;  %v2099_v60 = vpop.f32.mrb[6].mxu1 }
 0x2f1   :  { %v2100_v26 = vpop.f32.mrb[7].mxu1 }
 0x2f2   :  { %v2101_v23 = vadd.f32 %v2100_v26, %v2099_v60 }
 0x2f4   :  { %v1450_v31 = vadd.f32 %v2101_v23, %v1211_v57 }
 0x30c   :  { %v2134_v39 = vpop.f32.mrb[8].mxu1 }
 0x30d   :  { %v2135_v53 = vpop.f32.mrb[9].mxu1 }
 0x30e   :  { %v2136_v21 = vadd.f32 %v2135_v53, %v2134_v39 }
 0x310   :  { %v1588_v58 = vadd.f32 %v2136_v21, %v1443_v46  ;;  %v2137_v11 = vpop.f32.mrb[10].mxu1 }
 0x311   :  { %v2138_v7 = vpop.f32.mrb[11].mxu1 }
 0x312   :  { %v2139_v52 = vadd.f32 %v2138_v7, %v2137_v11 }
 0x314   :  { %v1597_v56 = vadd.f32 %v2139_v52, %v1450_v31 }
 0x32c   :  { %v2172_v13 = vpop.f32.mrb[12].mxu1 }
 0x32d   :  { %v2173_v20 = vpop.f32.mrb[13].mxu1 }
 0x32e   :  { %v2174_v49 = vadd.f32 %v2173_v20, %v2172_v13 }
 0x330   :  { %v1705_v6 = vadd.f32 %v2174_v49, %v1588_v58  ;;  %v2175_v29 = vpop.f32.mrb[14].mxu1 }
 0x331   :  { %v2176_v0 = vpop.f32.mrb[15].mxu1 }
 0x332   :  { %v2177_v30 = vadd.f32 %v2176_v0, %v2175_v29 }
 0x334   :  { %v1716_v40 = vadd.f32 %v2177_v30, %v1597_v56 }
 0x34c   :  { %v2210_v32 = vpop.f32.mrb[16].mxu1 }
 0x34d   :  { %v2211_v61 = vpop.f32.mrb[17].mxu1 }
 0x34e   :  { %v2212_v10 = vadd.f32 %v2211_v61, %v2210_v32 }
 0x350   :  { %v1884_v51 = vadd.f32 %v2212_v10, %v1705_v6  ;;  %v2213_v25 = vpop.f32.mrb[18].mxu1 }
 0x351   :  { %v2214_v5 = vpop.f32.mrb[19].mxu1 }
 0x352   :  { %v2215_v18 = vadd.f32 %v2214_v5, %v2213_v25 }
 0x354   :  { %v1891_v16 = vadd.f32 %v2215_v18, %v1716_v40 }
 0x36c   :  { %v2248_v48 = vpop.f32.mrb[20].mxu1 }
 0x36d   :  { %v2249_v9 = vpop.f32.mrb[21].mxu1 }
 0x36e   :  { %v2250_v8 = vadd.f32 %v2249_v9, %v2248_v48 }
 0x370   :  { %v1995_v12 = vadd.f32 %v2250_v8, %v1884_v51  ;;  %v2251_v22 = vpop.f32.mrb[22].mxu1 }
 0x371   :  { %v2252_v44 = vpop.f32.mrb[23].mxu1 }
 0x372   :  { %2005 = vst [vmem:[#allocation8] sm:$0xff] %v1995_v12  ;;  %v2253_v4 = vadd.f32 %v2252_v44, %v2251_v22 }
 0x374   :  { %v2002_v1 = vadd.f32 %v2253_v4, %v1891_v16 }
 0x376   :  { %2006 = vst [vmem:[#allocation8 + $0x8] sm:$0xff] %v2002_v1 }
 0x377   :  { %2756 = shalt.err (!%p2753_p0)
}
 0x378   :  { %s2757_s12 = scalar_lea.hbm %s4003_s5, 256 }
 0x379   :  { %p2758_p1 = scmp.ne.s32.totalorder %s4003_s5, %s2757_s12  ;;  %p2761_p2 = scmp.lt.u32.totalorder %s2757_s12, %s4003_s5 }
 0x37b   :  { %p2763_p3 = pnand %p2761_p2, %p2758_p1 }
 0x37d   :  { %2766 = shalt.err (!%p2763_p3)
}
 0x37e   :  { %2018 = dma.vmem_to_hbm [thread:$0]  %s2013_s8, 256, %s4003_s5, [#allocation4], %s2777_s1, %s2777_s1, %s2778_s17  }
 0x37f   :  { %2771 = dma.done.wait [#allocation4], 256  }
 0x380   :  { %2772 = vsyncadd [#allocation4], 4294967040 }
 0x381   :  { %2022 = vsyncpa [#allocation3], 1 }
 0x382   :  { %2023 = vsyncpa [#allocation6], 1 }
 0x383   :  { %2024 = vsyncpa [#allocation4], 1 }

</bundles_post_ra>
